<compile_context>
chip_gen: v6e
topology: v6e:2x2x1
jax: 0.10.0
libtpu: 0.0.40
codegen_flags: <defaults>
</compile_context>

<pallas_src>
import functools

import jax
import jax.numpy as jnp
from jax.experimental import pallas as pl
from jax.experimental.pallas import tpu as pltpu

EPS = 1e-5      # nn.BatchNorm2d default
LANE = 128      # TPU lane width
SUB = 8         # TPU sublane quantum


def _round_up(x, m):
    return ((x + m - 1) // m) * m


def _pick_tile_rows(h_out, w_out, target_rows):
    """Rows-per-tile th with th | H_out and tm = th*W_out a multiple of 128
    (lane-dense stores of the channel-major tile).  Falls back to the whole
    image (block == full dim, always a legal BlockSpec)."""
    target = max(target_rows, w_out)
    cand = [th for th in range(1, h_out + 1)
            if h_out % th == 0 and (th * w_out) % LANE == 0
            and th * w_out <= target]
    return max(cand) if cand else h_out


def _vmem_limit_bytes():
    """Generation-specific scoped-VMEM limit (None -> compiler default)."""
    try:
        kind = jax.devices()[0].device_kind.lower()
    except Exception:
        return None
    if "v5" in kind or "v6" in kind:
        return 96 * 1024 * 1024          # 128 MiB physical VMEM: let tiles grow
    if "v7" in kind or "7x" in kind:
        return 32 * 1024 * 1024          # 64 MiB physical on v7x: stay tight
    return None


# ----------------------------- Pallas kernels ------------------------------ #

def _conv_stats_kernel(x_ref, w_ref, conv_ref, stats_ref, acc_ref, *,
                       kh, kw, stride, th, w_out):
    """One (batch, row-block) grid step: direct conv + partial BN stats.

    x_ref    : (Hp, Wp, C_in)        padded NHWC image, bf16, resident across hb
    w_ref    : (kh*kw, C_in, C_pad)  per-tap weight matrices, bf16
    conv_ref : (c_sub, tm)           bf16 conv tile, channel-major, tm lane-dense
    stats_ref: (2, C_pad)            f32: row 0 = sum, row 1 = sum of squares
    acc_ref  : (tm, C_pad)           f32 VMEM accumulator scratch
    """
    hb = pl.program_id(1)
    c_in = x_ref.shape[-1]
    c_sub, tm = conv_ref.shape
    r0 = hb * (th * stride)                      # first padded-image row (di=0)

    acc_ref[...] = jnp.zeros_like(acc_ref)
    # kh*kw MXU dots with all th output rows batched into M = tm = th*w_out.
    # TODO(synk): fold the kh*kw taps into the contraction as well (im2col tile
    # in VMEM, one (tm, kh*kw*C_in) @ (kh*kw*C_in, C_pad) dot) to fill the MXU
    # K-dim for realistic C_in >= 64 layers.
    for di in range(kh):
        for dj in range(kw):
            if stride == 1:
                lhs3 = x_ref[pl.ds(r0 + di, th), pl.ds(dj, w_out), :]
            else:
                # TODO(synk): for stride > 1, pre-pack a stride-decimated tile
                # once per row block instead of strided loads on every tap.
                lhs3 = x_ref[pl.ds(r0 + di, th, stride=stride),
                             pl.ds(dj, w_out, stride=stride), :]
            lhs = lhs3.reshape(tm, c_in)          # merge (th, w_out) -> M rows
            acc_ref[...] += jnp.dot(lhs, w_ref[di * kw + dj],
                                    preferred_element_type=jnp.float32)

    acc = acc_ref[...]
    # Single-pass BatchNorm partials taken from the f32 accumulator.
    # TODO(synk): use shifted / Welford-style sums if activations can have
    # |mean| >> std (E[x^2] - E[x]^2 cancellation).
    stats_ref[0:1, :] = jnp.sum(acc, axis=0, keepdims=True)
    stats_ref[1:2, :] = jnp.sum(acc * acc, axis=0, keepdims=True)
    # Channel-major bf16 store: only round_up(C_out, 8) channels on sublanes,
    # tm on lanes -> unmasked lane-dense stores and no 128-channel padding of
    # the intermediate's HBM traffic.
    conv_ref[...] = acc.T[:c_sub, :].astype(conv_ref.dtype)


def _bn_silu_kernel(y_ref, scale_ref, shift_ref, o_ref, *, activation):
    """Channel-major BN affine + SiLU; lane-dense load/store, no transpose."""
    z = y_ref[...].astype(jnp.float32) * scale_ref[...] + shift_ref[...]
    if activation:
        # SiLU = z * sigmoid(z); exp and approx reciprocal both run on the EUP
        # slot, so the epilogue does not compete with the VPU / store path.
        z = z * pl.reciprocal(1.0 + jnp.exp(-z), approx=True)
    o_ref[...] = z.astype(o_ref.dtype)


# ------------------------------ Host wrapper ------------------------------- #

def bn_conv2d(x, weight, gamma, beta, *, stride, padding, groups=1,
              activation=True, target_rows=1024):
    """Conv2d(bias=False) + BatchNorm2d (training-mode batch stats) + SiLU."""
    # TODO(synk): grouped convolution (groups > 1) not implemented.
    assert groups == 1, "only groups=1 supported"
    N, C_in, H, W = x.shape
    C_out, C_in_w, kh, kw = weight.shape
    assert C_in_w == C_in

    H_out = (H + 2 * padding - kh) // stride + 1
    W_out = (W + 2 * padding - kw) // stride + 1
    M_img = H_out * W_out
    C_pad = _round_up(max(C_out, LANE), LANE)    # MXU RHS columns (lane-dense)
    c_sub = _round_up(C_out, SUB)                # intermediate channel axis

    th = _pick_tile_rows(H_out, W_out, target_rows)
    n_hb = H_out // th
    tm = th * W_out

    # ---- host-side prep (cheap layout only; no im2col materialisation) -----
    # NCHW -> NHWC, spatial zero-pad, staged directly in bf16 (the MXU input
    # dtype) so HBM reads and the resident VMEM block are halved vs f32.
    xp = jnp.transpose(x, (0, 2, 3, 1)).astype(jnp.bfloat16)
    xp = jnp.pad(xp, ((0, 0), (padding, padding), (padding, padding), (0, 0)))
    Hp, Wp = H + 2 * padding, W + 2 * padding
    # TODO(synk): for large Hp*Wp images (or tiny C_in, which lane-pads the
    # resident block), switch the input to a halo'd row-block manual DMA
    # (memory_space=pl.ANY + make_async_copy) instead of one whole image.

    # Per-tap weight matrices (kh*kw, C_in, C_pad), channel-padded, bf16.
    w_taps = jnp.transpose(weight, (2, 3, 1, 0)).reshape(kh * kw, C_in, C_out)
    w_taps = jnp.pad(w_taps, ((0, 0), (0, 0), (0, C_pad - C_out)))
    w_taps = w_taps.astype(jnp.bfloat16)

    vmem_limit = _vmem_limit_bytes()

    # ---- pass 1: direct conv (rows batched into MXU M) + partial BN stats --
    conv_kernel = functools.partial(
        _conv_stats_kernel, kh=kh, kw=kw, stride=stride, th=th, w_out=W_out)
    conv_cm, stats = pl.pallas_call(
        conv_kernel,
        grid=(N, n_hb),
        in_specs=[
            # Whole padded image of the current batch element; its block index
            # only changes with n, so it stays resident across all hb steps
            # (one HBM read per input element).
            pl.BlockSpec((None, Hp, Wp, C_in), lambda n, hb: (n, 0, 0, 0)),
            pl.BlockSpec((kh * kw, C_in, C_pad), lambda n, hb: (0, 0, 0)),
        ],
        out_specs=[
            pl.BlockSpec((None, c_sub, tm), lambda n, hb: (n, 0, hb)),
            pl.BlockSpec((None, None, 2, C_pad), lambda n, hb: (n, hb, 0, 0)),
        ],
        out_shape=[
            jax.ShapeDtypeStruct((N, c_sub, M_img), jnp.bfloat16),
            jax.ShapeDtypeStruct((N, n_hb, 2, C_pad), jnp.float32),
        ],
        scratch_shapes=[pltpu.VMEM((tm, C_pad), jnp.float32)],
        compiler_params=pltpu.CompilerParams(
            # Batch is the core-parallel axis: a 2-TC chip shards over N and
            # each core keeps reusing its resident image; row blocks stay
            # sequential per core.
            dimension_semantics=("parallel", "arbitrary"),
            vmem_limit_bytes=vmem_limit),
    )(xp, w_taps)

    # ---- tiny host reduce: batch stats -> per-channel scale / shift --------
    cnt = jnp.float32(N * M_img)
    s1 = jnp.sum(stats[:, :, 0, :], axis=(0, 1))                 # (C_pad,)
    s2 = jnp.sum(stats[:, :, 1, :], axis=(0, 1))
    mean = s1 / cnt
    var = jnp.maximum(s2 / cnt - mean * mean, 0.0)   # biased var (training)
    gamma_p = jnp.pad(gamma.astype(jnp.float32), (0, c_sub - C_out))
    beta_p = jnp.pad(beta.astype(jnp.float32), (0, c_sub - C_out))
    scale_v = gamma_p * jax.lax.rsqrt(var[:c_sub] + EPS)
    shift_v = beta_p - mean[:c_sub] * scale_v
    scale = scale_v.reshape(c_sub, 1)
    shift = shift_v.reshape(c_sub, 1)
    # TODO(synk): PyTorch's running_mean / running_var buffer updates
    # (training-mode side effect) are not produced here.

    # ---- pass 2: tiled channel-major BN affine + SiLU (no transpose) -------
    bn_kernel = functools.partial(_bn_silu_kernel, activation=activation)
    y_cm = pl.pallas_call(
        bn_kernel,
        grid=(N, n_hb),
        in_specs=[
            pl.BlockSpec((None, c_sub, tm), lambda n, hb: (n, 0, hb)),
            pl.BlockSpec((c_sub, 1), lambda n, hb: (0, 0)),
            pl.BlockSpec((c_sub, 1), lambda n, hb: (0, 0)),
        ],
        out_specs=pl.BlockSpec((None, c_sub, tm), lambda n, hb: (n, 0, hb)),
        # TODO(synk): emit bf16 here too if the consumer accepts it (halves
        # the store bytes of the HBM-bound epilogue; biggest relative win on
        # v5e).
        out_shape=jax.ShapeDtypeStruct((N, c_sub, M_img), jnp.float32),
        compiler_params=pltpu.CompilerParams(
            dimension_semantics=("parallel", "parallel"),
            vmem_limit_bytes=vmem_limit),
    )(conv_cm, scale, shift)

    # Channel-major output == NCHW already: free channel slice + reshape.
    return y_cm[:, :C_out, :].reshape(N, C_out, H_out, W_out)


# ----------------------------- reference (JAX) ----------------------------- #

def bn_conv2d_ref(x, weight, gamma, beta, *, stride, padding):
    conv = jax.lax.conv_general_dilated(
        x, weight, window_strides=(stride, stride),
        padding=((padding, padding), (padding, padding)),
        dimension_numbers=("NCHW", "OIHW", "NCHW"),
        precision=jax.lax.Precision.HIGHEST)
    mean = conv.mean(axis=(0, 2, 3), keepdims=True)
    var = conv.var(axis=(0, 2, 3), keepdims=True)
    z = (conv - mean) / jnp.sqrt(var + EPS)
    z = z * gamma.reshape(1, -1, 1, 1) + beta.reshape(1, -1, 1, 1)
    return z * jax.nn.sigmoid(z)


# ---------------------------------- main ----------------------------------- #

if __name__ == "__main__":
    # Module config: BN_Conv2d(in_channels=4, out_channels=8, kernel_size=3,
    #                          stride=1, padding=1, groups=1, bias=False,
    #                          activation=True)
    N, C_in, H, W = 2, 4, 16, 16
    C_out, ksz, stride, padding = 8, 3, 1, 1

    key = jax.random.PRNGKey(0)
    kx, kw_, kg, kb = jax.random.split(key, 4)
    x = jax.random.normal(kx, (N, C_in, H, W), dtype=jnp.float32)
    weight = jax.random.normal(kw_, (C_out, C_in, ksz, ksz),
                               dtype=jnp.float32) * 0.1
    gamma = 1.0 + 0.1 * jax.random.normal(kg, (C_out,), dtype=jnp.float32)
    beta = 0.1 * jax.random.normal(kb, (C_out,), dtype=jnp.float32)

    # target_rows=128 -> tm=128, two row-blocks per image (exercises tiling).
    out = bn_conv2d(x, weight, gamma, beta, stride=stride, padding=padding,
                    target_rows=128)
    out = jax.block_until_ready(out)

    ref = bn_conv2d_ref(x, weight, gamma, beta, stride=stride, padding=padding)
    assert out.shape == (N, C_out, H, W), out.shape
    # Tolerance reflects intentional bf16 MXU operands + bf16 conv intermediate
    # vs an f32 HIGHEST-precision reference (plus approx-reciprocal in SiLU).
    assert jnp.allclose(out, ref, atol=4e-2, rtol=4e-2), (
        float(jnp.max(jnp.abs(out - ref))))

    print("KERNEL_OK")
</pallas_src>

<mosaic_0001>
module attributes {stable_mosaic.version = 11 : i64} {
  func.func @_conv_stats_kernel(%arg0: i32, %arg1: i32, %arg2: memref<1x18x18x4xbf16, #tpu.memory_space<vmem>>, %arg3: memref<9x4x128xbf16, #tpu.memory_space<vmem>>, %arg4: memref<1x8x128xbf16, #tpu.memory_space<vmem>>, %arg5: memref<1x1x2x128xf32, #tpu.memory_space<vmem>>, %arg6: memref<128x128xf32, #tpu.memory_space<vmem>>) attributes {dimension_semantics = [#tpu.dimension_semantics<parallel>, #tpu.dimension_semantics<arbitrary>], iteration_bounds = array<i64: 2, 2>, scalar_prefetch = 0 : i64, scratch_operands = 1 : i64, tpu.core_type = #tpu.core_type<tc>, window_params = [{transform_indices = @transform_0, window_bounds = array<i64: 1, 18, 18, 4>}, {pipeline_mode = #tpu.pipeline_mode<synchronous>, transform_indices = @transform_1, window_bounds = array<i64: 9, 4, 128>}, {transform_indices = @transform_2, window_bounds = array<i64: 1, 8, 128>}, {transform_indices = @transform_3, window_bounds = array<i64: 1, 1, 2, 128>}]} {
    %c8_i32 = arith.constant 8 : i32
    %0 = arith.muli %arg1, %c8_i32 : i32
    %cst = arith.constant 0.000000e+00 : f32
    %1 = vector.broadcast %cst : f32 to vector<128x128xf32>
    %c0 = arith.constant 0 : index
    %c0_0 = arith.constant 0 : index
    %2 = vector.load %arg6[%c0, %c0_0] : memref<128x128xf32, #tpu.memory_space<vmem>>, vector<128x128xf32>
    tpu.vector_store %arg6[%c0, %c0_0], %1 {strides = array<i32>} : memref<128x128xf32, #tpu.memory_space<vmem>>, vector<128x128xf32>,
    %c0_i32 = arith.constant 0 : i32
    %3 = arith.addi %0, %c0_i32 : i32
    %c0_1 = arith.constant 0 : index
    %4 = arith.index_cast %3 : i32 to index
    %c0_2 = arith.constant 0 : index
    %c0_3 = arith.constant 0 : index
    %5 = vector.load %arg2[%c0_1, %4, %c0_2, %c0_3] : memref<1x18x18x4xbf16, #tpu.memory_space<vmem>>, vector<1x8x16x4xbf16>
    %6 = vector.shape_cast %5 : vector<1x8x16x4xbf16> to vector<8x16x4xbf16>
    %7 = vector.shape_cast %6 : vector<8x16x4xbf16> to vector<128x4xbf16>
    %c0_4 = arith.constant 0 : index
    %c0_5 = arith.constant 0 : index
    %8 = vector.load %arg6[%c0_4, %c0_5] : memref<128x128xf32, #tpu.memory_space<vmem>>, vector<128x128xf32>
    %c0_6 = arith.constant 0 : index
    %c0_7 = arith.constant 0 : index
    %c0_8 = arith.constant 0 : index
    %9 = vector.load %arg3[%c0_6, %c0_7, %c0_8] : memref<9x4x128xbf16, #tpu.memory_space<vmem>>, vector<1x4x128xbf16>
    %10 = vector.shape_cast %9 : vector<1x4x128xbf16> to vector<4x128xbf16>
    %cst_9 = arith.constant dense<0.000000e+00> : vector<128x128xf32>
    %11 = tpu.matmul %7, %10, %cst_9 {dimension_numbers = #tpu.dot_dimension_numbers<[1], [0], [0], [1], [0, 0, 1, 1], [], []>} : vector<128x4xbf16>, vector<4x128xbf16>, vector<128x128xf32> -> vector<128x128xf32>
    %12 = arith.addf %8, %11 : vector<128x128xf32>
    %c0_10 = arith.constant 0 : index
    %c0_11 = arith.constant 0 : index
    %13 = vector.load %arg6[%c0_10, %c0_11] : memref<128x128xf32, #tpu.memory_space<vmem>>, vector<128x128xf32>
    tpu.vector_store %arg6[%c0_10, %c0_11], %12 {strides = array<i32>} : memref<128x128xf32, #tpu.memory_space<vmem>>, vector<128x128xf32>,
    %c0_i32_12 = arith.constant 0 : i32
    %14 = arith.addi %0, %c0_i32_12 : i32
    %c0_13 = arith.constant 0 : index
    %15 = arith.index_cast %14 : i32 to index
    %c1 = arith.constant 1 : index
    %c0_14 = arith.constant 0 : index
    %16 = vector.load %arg2[%c0_13, %15, %c1, %c0_14] : memref<1x18x18x4xbf16, #tpu.memory_space<vmem>>, vector<1x8x16x4xbf16>
    %17 = vector.shape_cast %16 : vector<1x8x16x4xbf16> to vector<8x16x4xbf16>
    %18 = vector.shape_cast %17 : vector<8x16x4xbf16> to vector<128x4xbf16>
    %c0_15 = arith.constant 0 : index
    %c0_16 = arith.constant 0 : index
    %19 = vector.load %arg6[%c0_15, %c0_16] : memref<128x128xf32, #tpu.memory_space<vmem>>, vector<128x128xf32>
    %c1_17 = arith.constant 1 : index
    %c0_18 = arith.constant 0 : index
    %c0_19 = arith.constant 0 : index
    %20 = vector.load %arg3[%c1_17, %c0_18, %c0_19] : memref<9x4x128xbf16, #tpu.memory_space<vmem>>, vector<1x4x128xbf16>
    %21 = vector.shape_cast %20 : vector<1x4x128xbf16> to vector<4x128xbf16>
    %cst_20 = arith.constant dense<0.000000e+00> : vector<128x128xf32>
    %22 = tpu.matmul %18, %21, %cst_20 {dimension_numbers = #tpu.dot_dimension_numbers<[1], [0], [0], [1], [0, 0, 1, 1], [], []>} : vector<128x4xbf16>, vector<4x128xbf16>, vector<128x128xf32> -> vector<128x128xf32>
    %23 = arith.addf %19, %22 : vector<128x128xf32>
    %c0_21 = arith.constant 0 : index
    %c0_22 = arith.constant 0 : index
    %24 = vector.load %arg6[%c0_21, %c0_22] : memref<128x128xf32, #tpu.memory_space<vmem>>, vector<128x128xf32>
    tpu.vector_store %arg6[%c0_21, %c0_22], %23 {strides = array<i32>} : memref<128x128xf32, #tpu.memory_space<vmem>>, vector<128x128xf32>,
    %c0_i32_23 = arith.constant 0 : i32
    %25 = arith.addi %0, %c0_i32_23 : i32
    %c0_24 = arith.constant 0 : index
    %26 = arith.index_cast %25 : i32 to index
    %c2 = arith.constant 2 : index
    %c0_25 = arith.constant 0 : index
    %27 = vector.load %arg2[%c0_24, %26, %c2, %c0_25] : memref<1x18x18x4xbf16, #tpu.memory_space<vmem>>, vector<1x8x16x4xbf16>
    %28 = vector.shape_cast %27 : vector<1x8x16x4xbf16> to vector<8x16x4xbf16>
    %29 = vector.shape_cast %28 : vector<8x16x4xbf16> to vector<128x4xbf16>
    %c0_26 = arith.constant 0 : index
    %c0_27 = arith.constant 0 : index
    %30 = vector.load %arg6[%c0_26, %c0_27] : memref<128x128xf32, #tpu.memory_space<vmem>>, vector<128x128xf32>
    %c2_28 = arith.constant 2 : index
    %c0_29 = arith.constant 0 : index
    %c0_30 = arith.constant 0 : index
    %31 = vector.load %arg3[%c2_28, %c0_29, %c0_30] : memref<9x4x128xbf16, #tpu.memory_space<vmem>>, vector<1x4x128xbf16>
    %32 = vector.shape_cast %31 : vector<1x4x128xbf16> to vector<4x128xbf16>
    %cst_31 = arith.constant dense<0.000000e+00> : vector<128x128xf32>
    %33 = tpu.matmul %29, %32, %cst_31 {dimension_numbers = #tpu.dot_dimension_numbers<[1], [0], [0], [1], [0, 0, 1, 1], [], []>} : vector<128x4xbf16>, vector<4x128xbf16>, vector<128x128xf32> -> vector<128x128xf32>
    %34 = arith.addf %30, %33 : vector<128x128xf32>
    %c0_32 = arith.constant 0 : index
    %c0_33 = arith.constant 0 : index
    %35 = vector.load %arg6[%c0_32, %c0_33] : memref<128x128xf32, #tpu.memory_space<vmem>>, vector<128x128xf32>
    tpu.vector_store %arg6[%c0_32, %c0_33], %34 {strides = array<i32>} : memref<128x128xf32, #tpu.memory_space<vmem>>, vector<128x128xf32>,
    %c1_i32 = arith.constant 1 : i32
    %36 = arith.addi %0, %c1_i32 : i32
    %c0_34 = arith.constant 0 : index
    %37 = arith.index_cast %36 : i32 to index
    %c0_35 = arith.constant 0 : index
    %c0_36 = arith.constant 0 : index
    %38 = vector.load %arg2[%c0_34, %37, %c0_35, %c0_36] : memref<1x18x18x4xbf16, #tpu.memory_space<vmem>>, vector<1x8x16x4xbf16>
    %39 = vector.shape_cast %38 : vector<1x8x16x4xbf16> to vector<8x16x4xbf16>
    %40 = vector.shape_cast %39 : vector<8x16x4xbf16> to vector<128x4xbf16>
    %c0_37 = arith.constant 0 : index
    %c0_38 = arith.constant 0 : index
    %41 = vector.load %arg6[%c0_37, %c0_38] : memref<128x128xf32, #tpu.memory_space<vmem>>, vector<128x128xf32>
    %c3 = arith.constant 3 : index
    %c0_39 = arith.constant 0 : index
    %c0_40 = arith.constant 0 : index
    %42 = vector.load %arg3[%c3, %c0_39, %c0_40] : memref<9x4x128xbf16, #tpu.memory_space<vmem>>, vector<1x4x128xbf16>
    %43 = vector.shape_cast %42 : vector<1x4x128xbf16> to vector<4x128xbf16>
    %cst_41 = arith.constant dense<0.000000e+00> : vector<128x128xf32>
    %44 = tpu.matmul %40, %43, %cst_41 {dimension_numbers = #tpu.dot_dimension_numbers<[1], [0], [0], [1], [0, 0, 1, 1], [], []>} : vector<128x4xbf16>, vector<4x128xbf16>, vector<128x128xf32> -> vector<128x128xf32>
    %45 = arith.addf %41, %44 : vector<128x128xf32>
    %c0_42 = arith.constant 0 : index
    %c0_43 = arith.constant 0 : index
    %46 = vector.load %arg6[%c0_42, %c0_43] : memref<128x128xf32, #tpu.memory_space<vmem>>, vector<128x128xf32>
    tpu.vector_store %arg6[%c0_42, %c0_43], %45 {strides = array<i32>} : memref<128x128xf32, #tpu.memory_space<vmem>>, vector<128x128xf32>,
    %c1_i32_44 = arith.constant 1 : i32
    %47 = arith.addi %0, %c1_i32_44 : i32
    %c0_45 = arith.constant 0 : index
    %48 = arith.index_cast %47 : i32 to index
    %c1_46 = arith.constant 1 : index
    %c0_47 = arith.constant 0 : index
    %49 = vector.load %arg2[%c0_45, %48, %c1_46, %c0_47] : memref<1x18x18x4xbf16, #tpu.memory_space<vmem>>, vector<1x8x16x4xbf16>
    %50 = vector.shape_cast %49 : vector<1x8x16x4xbf16> to vector<8x16x4xbf16>
    %51 = vector.shape_cast %50 : vector<8x16x4xbf16> to vector<128x4xbf16>
    %c0_48 = arith.constant 0 : index
    %c0_49 = arith.constant 0 : index
    %52 = vector.load %arg6[%c0_48, %c0_49] : memref<128x128xf32, #tpu.memory_space<vmem>>, vector<128x128xf32>
    %c4 = arith.constant 4 : index
    %c0_50 = arith.constant 0 : index
    %c0_51 = arith.constant 0 : index
    %53 = vector.load %arg3[%c4, %c0_50, %c0_51] : memref<9x4x128xbf16, #tpu.memory_space<vmem>>, vector<1x4x128xbf16>
    %54 = vector.shape_cast %53 : vector<1x4x128xbf16> to vector<4x128xbf16>
    %cst_52 = arith.constant dense<0.000000e+00> : vector<128x128xf32>
    %55 = tpu.matmul %51, %54, %cst_52 {dimension_numbers = #tpu.dot_dimension_numbers<[1], [0], [0], [1], [0, 0, 1, 1], [], []>} : vector<128x4xbf16>, vector<4x128xbf16>, vector<128x128xf32> -> vector<128x128xf32>
    %56 = arith.addf %52, %55 : vector<128x128xf32>
    %c0_53 = arith.constant 0 : index
    %c0_54 = arith.constant 0 : index
    %57 = vector.load %arg6[%c0_53, %c0_54] : memref<128x128xf32, #tpu.memory_space<vmem>>, vector<128x128xf32>
    tpu.vector_store %arg6[%c0_53, %c0_54], %56 {strides = array<i32>} : memref<128x128xf32, #tpu.memory_space<vmem>>, vector<128x128xf32>,
    %c1_i32_55 = arith.constant 1 : i32
    %58 = arith.addi %0, %c1_i32_55 : i32
    %c0_56 = arith.constant 0 : index
    %59 = arith.index_cast %58 : i32 to index
    %c2_57 = arith.constant 2 : index
    %c0_58 = arith.constant 0 : index
    %60 = vector.load %arg2[%c0_56, %59, %c2_57, %c0_58] : memref<1x18x18x4xbf16, #tpu.memory_space<vmem>>, vector<1x8x16x4xbf16>
    %61 = vector.shape_cast %60 : vector<1x8x16x4xbf16> to vector<8x16x4xbf16>
    %62 = vector.shape_cast %61 : vector<8x16x4xbf16> to vector<128x4xbf16>
    %c0_59 = arith.constant 0 : index
    %c0_60 = arith.constant 0 : index
    %63 = vector.load %arg6[%c0_59, %c0_60] : memref<128x128xf32, #tpu.memory_space<vmem>>, vector<128x128xf32>
    %c5 = arith.constant 5 : index
    %c0_61 = arith.constant 0 : index
    %c0_62 = arith.constant 0 : index
    %64 = vector.load %arg3[%c5, %c0_61, %c0_62] : memref<9x4x128xbf16, #tpu.memory_space<vmem>>, vector<1x4x128xbf16>
    %65 = vector.shape_cast %64 : vector<1x4x128xbf16> to vector<4x128xbf16>
    %cst_63 = arith.constant dense<0.000000e+00> : vector<128x128xf32>
    %66 = tpu.matmul %62, %65, %cst_63 {dimension_numbers = #tpu.dot_dimension_numbers<[1], [0], [0], [1], [0, 0, 1, 1], [], []>} : vector<128x4xbf16>, vector<4x128xbf16>, vector<128x128xf32> -> vector<128x128xf32>
    %67 = arith.addf %63, %66 : vector<128x128xf32>
    %c0_64 = arith.constant 0 : index
    %c0_65 = arith.constant 0 : index
    %68 = vector.load %arg6[%c0_64, %c0_65] : memref<128x128xf32, #tpu.memory_space<vmem>>, vector<128x128xf32>
    tpu.vector_store %arg6[%c0_64, %c0_65], %67 {strides = array<i32>} : memref<128x128xf32, #tpu.memory_space<vmem>>, vector<128x128xf32>,
    %c2_i32 = arith.constant 2 : i32
    %69 = arith.addi %0, %c2_i32 : i32
    %c0_66 = arith.constant 0 : index
    %70 = arith.index_cast %69 : i32 to index
    %c0_67 = arith.constant 0 : index
    %c0_68 = arith.constant 0 : index
    %71 = vector.load %arg2[%c0_66, %70, %c0_67, %c0_68] : memref<1x18x18x4xbf16, #tpu.memory_space<vmem>>, vector<1x8x16x4xbf16>
    %72 = vector.shape_cast %71 : vector<1x8x16x4xbf16> to vector<8x16x4xbf16>
    %73 = vector.shape_cast %72 : vector<8x16x4xbf16> to vector<128x4xbf16>
    %c0_69 = arith.constant 0 : index
    %c0_70 = arith.constant 0 : index
    %74 = vector.load %arg6[%c0_69, %c0_70] : memref<128x128xf32, #tpu.memory_space<vmem>>, vector<128x128xf32>
    %c6 = arith.constant 6 : index
    %c0_71 = arith.constant 0 : index
    %c0_72 = arith.constant 0 : index
    %75 = vector.load %arg3[%c6, %c0_71, %c0_72] : memref<9x4x128xbf16, #tpu.memory_space<vmem>>, vector<1x4x128xbf16>
    %76 = vector.shape_cast %75 : vector<1x4x128xbf16> to vector<4x128xbf16>
    %cst_73 = arith.constant dense<0.000000e+00> : vector<128x128xf32>
    %77 = tpu.matmul %73, %76, %cst_73 {dimension_numbers = #tpu.dot_dimension_numbers<[1], [0], [0], [1], [0, 0, 1, 1], [], []>} : vector<128x4xbf16>, vector<4x128xbf16>, vector<128x128xf32> -> vector<128x128xf32>
    %78 = arith.addf %74, %77 : vector<128x128xf32>
    %c0_74 = arith.constant 0 : index
    %c0_75 = arith.constant 0 : index
    %79 = vector.load %arg6[%c0_74, %c0_75] : memref<128x128xf32, #tpu.memory_space<vmem>>, vector<128x128xf32>
    tpu.vector_store %arg6[%c0_74, %c0_75], %78 {strides = array<i32>} : memref<128x128xf32, #tpu.memory_space<vmem>>, vector<128x128xf32>,
    %c2_i32_76 = arith.constant 2 : i32
    %80 = arith.addi %0, %c2_i32_76 : i32
    %c0_77 = arith.constant 0 : index
    %81 = arith.index_cast %80 : i32 to index
    %c1_78 = arith.constant 1 : index
    %c0_79 = arith.constant 0 : index
    %82 = vector.load %arg2[%c0_77, %81, %c1_78, %c0_79] : memref<1x18x18x4xbf16, #tpu.memory_space<vmem>>, vector<1x8x16x4xbf16>
    %83 = vector.shape_cast %82 : vector<1x8x16x4xbf16> to vector<8x16x4xbf16>
    %84 = vector.shape_cast %83 : vector<8x16x4xbf16> to vector<128x4xbf16>
    %c0_80 = arith.constant 0 : index
    %c0_81 = arith.constant 0 : index
    %85 = vector.load %arg6[%c0_80, %c0_81] : memref<128x128xf32, #tpu.memory_space<vmem>>, vector<128x128xf32>
    %c7 = arith.constant 7 : index
    %c0_82 = arith.constant 0 : index
    %c0_83 = arith.constant 0 : index
    %86 = vector.load %arg3[%c7, %c0_82, %c0_83] : memref<9x4x128xbf16, #tpu.memory_space<vmem>>, vector<1x4x128xbf16>
    %87 = vector.shape_cast %86 : vector<1x4x128xbf16> to vector<4x128xbf16>
    %cst_84 = arith.constant dense<0.000000e+00> : vector<128x128xf32>
    %88 = tpu.matmul %84, %87, %cst_84 {dimension_numbers = #tpu.dot_dimension_numbers<[1], [0], [0], [1], [0, 0, 1, 1], [], []>} : vector<128x4xbf16>, vector<4x128xbf16>, vector<128x128xf32> -> vector<128x128xf32>
    %89 = arith.addf %85, %88 : vector<128x128xf32>
    %c0_85 = arith.constant 0 : index
    %c0_86 = arith.constant 0 : index
    %90 = vector.load %arg6[%c0_85, %c0_86] : memref<128x128xf32, #tpu.memory_space<vmem>>, vector<128x128xf32>
    tpu.vector_store %arg6[%c0_85, %c0_86], %89 {strides = array<i32>} : memref<128x128xf32, #tpu.memory_space<vmem>>, vector<128x128xf32>,
    %c2_i32_87 = arith.constant 2 : i32
    %91 = arith.addi %0, %c2_i32_87 : i32
    %c0_88 = arith.constant 0 : index
    %92 = arith.index_cast %91 : i32 to index
    %c2_89 = arith.constant 2 : index
    %c0_90 = arith.constant 0 : index
    %93 = vector.load %arg2[%c0_88, %92, %c2_89, %c0_90] : memref<1x18x18x4xbf16, #tpu.memory_space<vmem>>, vector<1x8x16x4xbf16>
    %94 = vector.shape_cast %93 : vector<1x8x16x4xbf16> to vector<8x16x4xbf16>
    %95 = vector.shape_cast %94 : vector<8x16x4xbf16> to vector<128x4xbf16>
    %c0_91 = arith.constant 0 : index
    %c0_92 = arith.constant 0 : index
    %96 = vector.load %arg6[%c0_91, %c0_92] : memref<128x128xf32, #tpu.memory_space<vmem>>, vector<128x128xf32>
    %c8 = arith.constant 8 : index
    %c0_93 = arith.constant 0 : index
    %c0_94 = arith.constant 0 : index
    %97 = vector.load %arg3[%c8, %c0_93, %c0_94] : memref<9x4x128xbf16, #tpu.memory_space<vmem>>, vector<1x4x128xbf16>
    %98 = vector.shape_cast %97 : vector<1x4x128xbf16> to vector<4x128xbf16>
    %cst_95 = arith.constant dense<0.000000e+00> : vector<128x128xf32>
    %99 = tpu.matmul %95, %98, %cst_95 {dimension_numbers = #tpu.dot_dimension_numbers<[1], [0], [0], [1], [0, 0, 1, 1], [], []>} : vector<128x4xbf16>, vector<4x128xbf16>, vector<128x128xf32> -> vector<128x128xf32>
    %100 = arith.addf %96, %99 : vector<128x128xf32>
    %c0_96 = arith.constant 0 : index
    %c0_97 = arith.constant 0 : index
    %101 = vector.load %arg6[%c0_96, %c0_97] : memref<128x128xf32, #tpu.memory_space<vmem>>, vector<128x128xf32>
    tpu.vector_store %arg6[%c0_96, %c0_97], %100 {strides = array<i32>} : memref<128x128xf32, #tpu.memory_space<vmem>>, vector<128x128xf32>,
    %c0_98 = arith.constant 0 : index
    %c0_99 = arith.constant 0 : index
    %102 = vector.load %arg6[%c0_98, %c0_99] : memref<128x128xf32, #tpu.memory_space<vmem>>, vector<128x128xf32>
    %cst_100 = arith.constant dense<0.000000e+00> : vector<128xf32>
    %103 = vector.multi_reduction <add>, %102, %cst_100 [0] : vector<128x128xf32> to vector<128xf32>
    %104 = vector.shape_cast %103 : vector<128xf32> to vector<1x128xf32>
    %c0_101 = arith.constant 0 : index
    %c0_102 = arith.constant 0 : index
    %c0_103 = arith.constant 0 : index
    %c0_104 = arith.constant 0 : index
    %105 = vector.load %arg5[%c0_101, %c0_102, %c0_103, %c0_104] : memref<1x1x2x128xf32, #tpu.memory_space<vmem>>, vector<1x1x1x128xf32>
    %106 = vector.shape_cast %105 : vector<1x1x1x128xf32> to vector<1x128xf32>
    %107 = vector.shape_cast %104 : vector<1x128xf32> to vector<1x1x1x128xf32>
    tpu.vector_store %arg5[%c0_101, %c0_102, %c0_103, %c0_104], %107 {strides = array<i32>} : memref<1x1x2x128xf32, #tpu.memory_space<vmem>>, vector<1x1x1x128xf32>,
    %108 = arith.mulf %102, %102 : vector<128x128xf32>
    %cst_105 = arith.constant dense<0.000000e+00> : vector<128xf32>
    %109 = vector.multi_reduction <add>, %108, %cst_105 [0] : vector<128x128xf32> to vector<128xf32>
    %110 = vector.shape_cast %109 : vector<128xf32> to vector<1x128xf32>
    %c0_106 = arith.constant 0 : index
    %c0_107 = arith.constant 0 : index
    %c1_108 = arith.constant 1 : index
    %c0_109 = arith.constant 0 : index
    %111 = vector.load %arg5[%c0_106, %c0_107, %c1_108, %c0_109] : memref<1x1x2x128xf32, #tpu.memory_space<vmem>>, vector<1x1x1x128xf32>
    %112 = vector.shape_cast %111 : vector<1x1x1x128xf32> to vector<1x128xf32>
    %113 = vector.shape_cast %110 : vector<1x128xf32> to vector<1x1x1x128xf32>
    tpu.vector_store %arg5[%c0_106, %c0_107, %c1_108, %c0_109], %113 {strides = array<i32>} : memref<1x1x2x128xf32, #tpu.memory_space<vmem>>, vector<1x1x1x128xf32>,
    %114 = tpu.transpose %102, [1, 0] : vector<128x128xf32> -> vector<128x128xf32>
    %115 = vector.extract_strided_slice %114 {offsets = [0, 0], sizes = [8, 128], strides = [1, 1]} : vector<128x128xf32> to vector<8x128xf32>
    %116 = arith.truncf %115 : vector<8x128xf32> to vector<8x128xbf16>
    %c0_110 = arith.constant 0 : index
    %c0_111 = arith.constant 0 : index
    %c0_112 = arith.constant 0 : index
    %117 = vector.load %arg4[%c0_110, %c0_111, %c0_112] : memref<1x8x128xbf16, #tpu.memory_space<vmem>>, vector<1x8x128xbf16>
    %118 = vector.shape_cast %117 : vector<1x8x128xbf16> to vector<8x128xbf16>
    %119 = vector.shape_cast %116 : vector<8x128xbf16> to vector<1x8x128xbf16>
    tpu.vector_store %arg4[%c0_110, %c0_111, %c0_112], %119 {strides = array<i32>} : memref<1x8x128xbf16, #tpu.memory_space<vmem>>, vector<1x8x128xbf16>,
    return
  }
  func.func @transform_0(%arg0: i32, %arg1: i32) -> (i32, i32, i32, i32) {
    %c0_i32 = arith.constant 0 : i32
    %c0_i32_0 = arith.constant 0 : i32
    %c0_i32_1 = arith.constant 0 : i32
    %c0_i32_2 = arith.constant 0 : i32
    return %arg0, %c0_i32, %c0_i32_0, %c0_i32_1 : i32, i32, i32, i32
  }
  func.func @transform_1(%arg0: i32, %arg1: i32) -> (i32, i32, i32) {
    %c0_i32 = arith.constant 0 : i32
    %c0_i32_0 = arith.constant 0 : i32
    %c0_i32_1 = arith.constant 0 : i32
    %c0_i32_2 = arith.constant 0 : i32
    return %c0_i32, %c0_i32_0, %c0_i32_1 : i32, i32, i32
  }
  func.func @transform_2(%arg0: i32, %arg1: i32) -> (i32, i32, i32) {
    %c0_i32 = arith.constant 0 : i32
    %c0_i32_0 = arith.constant 0 : i32
    return %arg0, %c0_i32, %arg1 : i32, i32, i32
  }
  func.func @transform_3(%arg0: i32, %arg1: i32) -> (i32, i32, i32, i32) {
    %c0_i32 = arith.constant 0 : i32
    %c0_i32_0 = arith.constant 0 : i32
    %c0_i32_1 = arith.constant 0 : i32
    return %arg0, %arg1, %c0_i32, %c0_i32_0 : i32, i32, i32, i32
  }
}

</mosaic_0001>

<bundles_post_ra>
// kernel: tpu_custom_call.1
= control target key start
LH: loop header
LB: loop body
LE: loop exit
PB: predicated region body
PF: predicated region fallthrough
CT: control target
= control target key end

     0   :  { %9 = vsyncpa [#allocation4], 0  ;;  %s5100_s0 = inlined_call_operand.vmem [shape: bf16[2,18,18,4], index: 0, kind: input, shape index: {}]   ;;  %s5101_s1 = inlined_call_operand.vmem [shape: bf16[9,4,128], index: 1, kind: input, shape index: {}]   ;;  %s5102_s2 = inlined_call_operand.hbm [shape: bf16[2,8,256], index: 2, kind: output, shape index: {0}]   ;;  %s5103_s3 = inlined_call_operand.hbm [shape: f32[2,2,2,128], index: 3, kind: output, shape index: {1}]  }
   0x1   :  { %11 = vsyncpa [#allocation4 + $0x1], 0 }
   0x2   :  { %12 = vsyncpa [#allocation6], 0 }
   0x3   :  { %14 = vsyncpa [#allocation6 + $0x1], 0  ;;  %s4162_s12 = smov 0   ;;  %s4164_s13 = smov 0  }
   0x4   :  { %s4166_s14 = smov 0   ;;  %s4168_s15 = smov 0  }
   0x5   :  { %s4170_s16 = smov 0   ;;  %s4172_s17 = smov 0  }
   0x6   :  { %s4174_s18 = smov 0   ;;  %s4176_s19 = smov 0  }
   0x7 LB: > { %s3332_s20 = sadd.s32 4294967295, %s4138_s19   ;;  %s3333_s21 = sadd.s32 4294967294, %s4138_s19   ;;  %s4138_s19 = sphi %s4176_s19, %s20_s19   ;;  %s4134_s18 = sphi %s4174_s18, %s5144_s18   ;;  %s4130_s17 = sphi %s4172_s17, %s5143_s17   ;;  %s4126_s16 = sphi %s4170_s16, %s5142_s16   ;;  %s4122_s15 = sphi %s4168_s15, %s5141_s15   ;;  %s4118_s14 = sphi %s4166_s14, %s5140_s14   ;;  %s4114_s13 = sphi %s4164_s13, %s5139_s13   ;;  %s4110_s12 = sphi %s4162_s12, %s5138_s12  }
   0x8   : > { %s29_s22 = sadd.s32 1, %s4130_s17  ;;  %s32_s23 = sadd.s32 1, %s4134_s18 }
   0x9   : > { %p30_p0 = scmp.ge.s32.totalorder %s29_s22, 2  ;;  %p98_p1 = scmp.ne.s32.totalorder %s4118_s14, %s4114_s13 }
   0xa   : > { %p99_p2 = scmp.eq.s32.totalorder %s3332_s20, 3  ;;  %p104_p5 = scmp.ne.s32.totalorder %s4114_s13, %s4110_s12 }
   0xb   : > { %s5146_s22 = smov (%p30_p0, %s29_s22), 0  ;;  %s5148_s23 = smov (!%p30_p0, %s32_s23), %s4134_s18 }
   0xc   : > { %s84_s24 = ssub.s32 %s4130_s17, %s5146_s22  ;;  %p4213_p3 = por %p99_p2, %p98_p1 }
   0xd   : > { %p34_p4 = scmp.ge.s32.totalorder %s5148_s23, 2  ;;  %p105_p6 = scmp.eq.s32.totalorder %s3333_s21, 3 }
   0xe   : > { %p3336_p7 = scmp.ge.s32.totalorder %s4138_s19, 1  ;;  %p162_p9 = scmp.lt.s32.totalorder %s4138_s19, 5 }
   0xf   : > { %s5150_s23 = smov (%p34_p4, %s5148_s23), 0  ;;  %p4222_p8 = por %p105_p6, %p104_p5 }
  0x10   : > { %s83_s27 = ssub.s32 %s4134_s18, %s5150_s23  ;;  %s88_s28 = sadd.s32 1, %s4118_s14 }
  0x11   : > { %s85_s29 = sor.u32 %s84_s24, %s83_s27  ;;  %p163_p10 = pnand %p3336_p7, %p162_p9 }
  0x12   : > { %p86_p11 = scmp.eq.s32.totalorder %s85_s29, 0 }
  0x13   : > { %166 = sbr.rel (%p163_p10) target bundleno = 509 (0x1fd), region = 28 }
  0x14   : > { %s4231_s30 = scalar_select %p86_p11, %s4118_s14, %s88_s28  }
  0x18   : > { %v249_v0 = vld [vmem:[%s5101_s1] sm:$0x3]  ;;  %vm315_vm0 = vcmask 1041408   ;;  %p191_p12 = scmp.lt.s32.totalorder %s4126_s16, 1  ;;  %v3359_v2 = vld [vmem:[%s5101_s1 + $0x2] sm:$0x3] }
  0x19   : > { %3906 = vmatprep.subr.msk.bf16.mxu1 %vm315_vm0, %v249_v0  ;;  %3905 = vmatprep.subr.msk.bf16.mxu0 %vm315_vm0, %v249_v0  ;;  %v317_v1 = vsel %vm315_vm0, %v249_v0, 0  ;;  %v3384_v3 = vld [vmem:[%s5101_s1 + $0x4] sm:$0x3]  ;;  %s3659_s11 = smul.u32 96, %s4122_s15  ;;  %vm290_vm1 = vcmask 31744   ;;  %v734_v4 = vsel %vm315_vm0, %v3359_v2, 0 }
  0x1a   : > { %3904 = vmatpush3.bf16.msra.mxu1 %v317_v1  ;;  %3742 = vmatpush3.bf16.msra.mxu0 %v317_v1  ;;  %s192_s10 = scalar_select %p191_p12, %s4126_s16, 1  ;;  %v3419_v5 = vld [vmem:[%s5101_s1 + $0x6] sm:$0x3]  ;;  %v3460_v6 = vld [vmem:[%s5101_s1 + $0x8] sm:$0x3]  ;;  %v1039_v9 = vsel %vm315_vm0, %v3384_v3, 0 }
  0x1b   : > { %3907 = vmatprep.subr.msk.bf16.mxu1 %vm315_vm0, %v3359_v2  ;;  %3908 = vmatprep.subr.msk.bf16.mxu0 %vm315_vm0, %v3384_v3  ;;  %v4265_v7 = vld [vmem:[%s5101_s1 + $0xa] sm:$0x3]  ;;  %vm913_vm2 = vcmask 1042432   ;;  %v4272_v10 = vld [vmem:[%s5101_s1 + $0xc] sm:$0x3]  ;;  %vm914_vm3 = vcmask 1046532  }
  0x1c   : > { %s3915_s20 = smul.u32 216, %s192_s10  ;;  %v4278_v12 = vld [vmem:[%s5101_s1 + $0xe] sm:$0x3]  ;;  %v4283_v14 = vsel %vm315_vm0, %v3419_v5, 0  ;;  %v4288_v15 = vld [vmem:[%s5101_s1 + $0x10] sm:$0x3]  ;;  %vm4329_vm6 = vmor %vm913_vm2, %vm914_vm3 }
  0x1d   : > { %vm472_vm4 = vsmask.f32 3328  ;;  %vm473_vm5 = vsmask.f32 7440  ;;  %v4293_v17 = vsel %vm315_vm0, %v3460_v6, 0  ;;  %v4299_v19 = vsel %vm315_vm0, %v4265_v7, 0 }
  0x1e   : > { %s195_s27 = scalar_lea.vmem %s5100_s0, %s3915_s20  ;;  %v4305_v21 = vsel %vm315_vm0, %v4272_v10, 0  ;;  %v4311_v23 = vsel %vm315_vm0, %v4278_v12, 0  ;;  %v4318_v25 = vsel %vm315_vm0, %v4288_v15, 0  ;;  %vm4341_vm7 = vmor %vm472_vm4, %vm473_vm5 }
  0x1f   : > { %s4254_s28 = scalar_lea.vmem %s195_s27, %s3659_s11  ;;  %s5021_s27 = sand.u32 1, %s4114_s13  }
  0x20   : > { %v3992_v8 = vld [vmem:[%s4254_s28] sm:$0xff]   ;;  %v3993_v11 = vld [vmem:[%s4254_s28 + $0x30] sm:$0xff]   ;;  %v3996_v18 = vld [vmem:[%s4254_s28 + $0x18] sm:$0xff]   ;;  %s3338_s29 = sshll.u32 %s5021_s27, 1  ;;  %s3186_s9 = scalar_lea.sflag [#allocation6], %s5021_s27 }
  0x21   : > { %3743 = vmatprep.mubr.msk.bf16.mxu0 %vm290_vm1, %v3992_v8  ;;  %v3994_v13 = vld [vmem:[%s4254_s28 + $0xc] sm:$0xff]   ;;  %3751 = vmatprep.mubr.msk.bf16.mxu1 %vm290_vm1, %v3993_v11  ;;  %v3995_v16 = vld [vmem:[%s4254_s28 + $0x3c] sm:$0xff]   ;;  %v3998_v22 = vld [vmem:[%s4254_s28 + $0x24] sm:$0xff]   ;;  %s190_s6 = scalar_lea.vmem [#allocation5], %s3338_s29  ;;  %s4140_s11 = smov [#allocation5]  }
  0x22   : > { %3744 = vmatmul.mubr.msk.bf16.vlgmr.msra.gmra.mxu0 %vm290_vm1, %v3994_v13  ;;  %3752 = vmatmul.mubr.msk.bf16.vlgmr.msra.gmra.mxu1 %vm290_vm1, %v3995_v16  ;;  %v3997_v20 = vld [vmem:[%s4254_s28 + $0x48] sm:$0xff]   ;;  %v3999_v24 = vld [vmem:[%s4254_s28 + $0x54] sm:$0xff]   ;;  %v448_v26 = vld [vmem:[%s4254_s28] sm:$0xf]  ;;  %s3216_s7 = sshll.u32 %s190_s6, 4  ;;  %s4020_s20 = sshll.u32 %s4140_s11, 4  ;;  %s3217_s7 = int_to_ptr.vmem [resolvable:$true] %s3216_s7  ;;  %s4021_s20 = int_to_ptr.vmem [resolvable:$false] %s4020_s20 }
  0x23   : > { %3778 = vmatpush3.bf16.msra.mxu0 %v1039_v9  ;;  %3760 = vmatpush3.bf16.msra.mxu1 %v734_v4  ;;  %v449_v27 = vld [vmem:[%s4254_s28 + $0x4] sm:$0xf]  ;;  %v450_v28 = vld [vmem:[%s4254_s28 + $0x8] sm:$0x1]  ;;  %v476_v29 = vshrl.u32 %v448_v26, 16  ;;  %v479_v30 = vshll.u32 %v448_v26, 16  ;;  %p4023_p2 = scmp.lt.s32.totalorder %s3217_s7, %s4021_s20 }
  0x24   : > { %3747 = vmatprep.mubr.msk.bf16.mxu0 %vm290_vm1, %v3996_v18  ;;  %3755 = vmatprep.mubr.msk.bf16.mxu1 %vm290_vm1, %v3997_v20  ;;  %v485_v31 = vshll.u32 %v449_v27, 16  ;;  %v489_v32 = vshrl.u32 %v449_v27, 16  ;;  %v865_v33 = vld [vmem:[%s4254_s28] sm:$0xe]  ;;  %v495_v34 = vshll.u32 %v450_v28, 16  ;;  %s4016_s10 = scalar_lea.vmem %s3217_s7, 32 }
  0x25   : > { %3909 = vmatprep.subr.msk.bf16.mxu1 %vm315_vm0, %v3419_v5  ;;  %3910 = vmatprep.subr.msk.bf16.mxu0 %vm315_vm0, %v3460_v6  ;;  %v866_v35 = vld [vmem:[%s4254_s28 + $0x4] sm:$0xf]  ;;  %v867_v36 = vld [vmem:[%s4254_s28 + $0x8] sm:$0x1]  ;;  %v3376_v37 = vrot.slane %v865_v33, 9  ;;  %v478_v38 = vrot.slane %v476_v29, 4  ;;  %p4017_p13 = scmp.ne.s32.totalorder %s3217_s7, %s4016_s10 }
  0x26   : > { %v481_v39 = vrot.slane %v479_v30, 5  ;;  %v487_v40 = vrot.slane %v485_v31, 5  ;;  %v491_v41 = vrot.slane %v489_v32, 4  ;;  %v451_v43 = vld [vmem:[%s4254_s28 + $0xc] sm:$0xf]  ;;  %v497_v44 = vrot.slane %v495_v34, 5 }
  0x27   : > { %v918_v45 = vrot.slane %v866_v35, 5  ;;  %v921_v46 = vrot.slane %v867_v36, 5  ;;  %v452_v47 = vld [vmem:[%s4254_s28 + $0x10] sm:$0xf]  ;;  %v500_v48 = vshrl.u32 %v451_v43, 16  ;;  %v503_v52 = vshll.u32 %v451_v43, 16  ;;  %p4018_p0 = pnand %p4017_p13, %p4213_p3 }
  0x28   : > { %v482_v49 = vor.u32 %v481_v39, %v478_v38  ;;  %v492_v50 = vor.u32 %v491_v41, %v487_v40  ;;  %v453_v51 = vld [vmem:[%s4254_s28 + $0x14] sm:$0x1]  ;;  %v509_v53 = vshll.u32 %v452_v47, 16  ;;  %v868_v54 = vld [vmem:[%s4254_s28 + $0xc] sm:$0xe]  ;;  %v513_v59 = vshrl.u32 %v452_v47, 16 }
  0x29   : > { %v919_v56 = vsel %vm4329_vm6, %v3376_v37, %v918_v45  ;;  %v920_v57 = vrot.slane %v918_v45, 4  ;;  %v502_v58 = vrot.slane %v500_v48, 4  ;;  %v869_v60 = vld [vmem:[%s4254_s28 + $0x10] sm:$0xf]  ;;  %v505_v63 = vrot.slane %v503_v52, 5  ;;  %p4019_p1 = pneg %p4018_p0  ;;  %s4022_s21 = scalar_lea.vmem %s4021_s20, 64 }
  0x2a   : > { %3748 = vmatmul.mubr.msk.bf16.gmra.mxu0 %vm290_vm1, %v3998_v22  ;;  %3756 = vmatmul.mubr.msk.bf16.gmra.mxu1 %vm290_vm1, %v3999_v24  ;;  %v483_v61 = vrot.slane %v482_v49, 4  ;;  %v493_v62 = vrot.slane %v492_v50, 4  ;;  %v511_v0 = vrot.slane %v509_v53, 5  ;;  %v870_v1 = vld [vmem:[%s4254_s28 + $0x14] sm:$0x1]  ;;  %v515_v3 = vrot.slane %v513_v59, 4  ;;  %p4024_p4 = scmp.lt.s32.totalorder %s4022_s21, %s4016_s10 }
  0x2b   : > { %v922_v2 = vsel %vm4329_vm6, %v920_v57, %v921_v46  ;;  %v519_v4 = vshll.u32 %v453_v51, 16  ;;  %v3377_v5 = vrot.slane %v868_v54, 9  ;;  %v454_v6 = vld [vmem:[%s4254_s28 + $0x18] sm:$0xf]  ;;  %v506_v13 = vor.u32 %v505_v63, %v502_v58  ;;  %v455_v16 = vld [vmem:[%s4254_s28 + $0x1c] sm:$0xf] }
  0x2c   : > { %v488_v8 = vsel %vm4341_vm7, %v483_v61, %v487_v40  ;;  %v498_v9 = vsel %vm4341_vm7, %v493_v62, %v497_v44  ;;  %v3385_v11 = vcombine.low %v919_v56, %v922_v2  ;;  %v516_v20 = vor.u32 %v515_v3, %v511_v0  ;;  %v456_v26 = vld [vmem:[%s4254_s28 + $0x20] sm:$0x1]  ;;  %v871_v31 = vld [vmem:[%s4254_s28 + $0x18] sm:$0xe]  ;;  %v872_v36 = vld [vmem:[%s4254_s28 + $0x1c] sm:$0xf]  ;;  %p4025_p5 = por %p4024_p4, %p4023_p2 }
  0x2d   : > { %v3360_v18 = vcombine.low %v488_v8, %v498_v9  ;;  %v521_v22 = vrot.slane %v519_v4, 5  ;;  %v925_v24 = vrot.slane %v869_v60, 5  ;;  %v507_v27 = vrot.slane %v506_v13, 4  ;;  %v873_v41 = vld [vmem:[%s4254_s28 + $0x20] sm:$0x1] }
  0x2e   : > { %3779 = vmatprep.mubr.msk.bf16.mxu0 %vm290_vm1, %v3385_v11  ;;  %v928_v28 = vrot.slane %v870_v1, 5  ;;  %v524_v29 = vshrl.u32 %v454_v6, 16  ;;  %v527_v30 = vshll.u32 %v454_v6, 16  ;;  %v517_v32 = vrot.slane %v516_v20, 4  ;;  %v457_v47 = vld [vmem:[%s4254_s28 + $0x24] sm:$0xf]  ;;  %p4026_p6 = pnand %p4025_p5, %p4019_p1 }
  0x2f   : > { %3761 = vmatprep.mubr.msk.bf16.mxu1 %vm290_vm1, %v3360_v18  ;;  %v926_v33 = vsel %vm4329_vm6, %v3377_v5, %v925_v24  ;;  %v927_v34 = vrot.slane %v925_v24, 4  ;;  %v533_v35 = vshll.u32 %v455_v16, 16  ;;  %v512_v37 = vsel %vm4341_vm7, %v507_v27, %v511_v0  ;;  %v458_v52 = vld [vmem:[%s4254_s28 + $0x28] sm:$0xf]  ;;  %v459_v58 = vld [vmem:[%s4254_s28 + $0x2c] sm:$0x1] }
  0x30   : > { %v526_v38 = vrot.slane %v524_v29, 4  ;;  %v529_v39 = vrot.slane %v527_v30, 5  ;;  %v537_v40 = vshrl.u32 %v455_v16, 16  ;;  %v522_v43 = vsel %vm4341_vm7, %v517_v32, %v521_v22  ;;  %v874_v63 = vld [vmem:[%s4254_s28 + $0x24] sm:$0xe] }
  0x31   : > { %v929_v44 = vsel %vm4329_vm6, %v927_v34, %v928_v28  ;;  %v535_v45 = vrot.slane %v533_v35, 5  ;;  %v543_v46 = vshll.u32 %v456_v26, 16  ;;  %v3361_v48 = vcombine.low %v512_v37, %v522_v43  ;;  %v875_v4 = vld [vmem:[%s4254_s28 + $0x28] sm:$0xf]  ;;  %v876_v11 = vld [vmem:[%s4254_s28 + $0x2c] sm:$0x1] }
  0x32   : > { %v3386_v49 = vcombine.low %v926_v33, %v929_v44  ;;  %v530_v50 = vor.u32 %v529_v39, %v526_v38  ;;  %v539_v51 = vrot.slane %v537_v40, 4  ;;  %v3378_v54 = vrot.slane %v871_v31, 9  ;;  %v460_v18 = vld [vmem:[%s4254_s28 + $0x30] sm:$0xf]  ;;  %v461_v27 = vld [vmem:[%s4254_s28 + $0x34] sm:$0xf] }
  0x33   : > { %v545_v53 = vrot.slane %v543_v46, 5  ;;  %v932_v56 = vrot.slane %v872_v36, 5  ;;  %v935_v57 = vrot.slane %v873_v41, 5  ;;  %3762 = vmatmul.mubr.msk.bf16.vlgmr.msra.gmra.mxu1 %vm290_vm1, %v3361_v48  ;;  %v548_v61 = vshrl.u32 %v457_v47, 16  ;;  %v462_v30 = vld [vmem:[%s4254_s28 + $0x38] sm:$0x1] }
  0x34   : > { %3780 = vmatmul.mubr.msk.bf16.vlgmr.msra.gmra.mxu0 %vm290_vm1, %v3386_v49  ;;  %v531_v59 = vrot.slane %v530_v50, 4  ;;  %v540_v60 = vor.u32 %v539_v51, %v535_v45  ;;  %v551_v62 = vshll.u32 %v457_v47, 16  ;;  %3796 = vmatpush3.bf16.msra.mxu1 %v4283_v14  ;;  %v557_v2 = vshll.u32 %v458_v52, 16  ;;  %v877_v35 = vld [vmem:[%s4254_s28 + $0x30] sm:$0xe] }
  0x35   : > { %3814 = vmatpush3.bf16.msra.mxu0 %v4293_v17  ;;  %v933_v0 = vsel %vm4329_vm6, %v3378_v54, %v932_v56  ;;  %v934_v1 = vrot.slane %v932_v56, 4  ;;  %v561_v3 = vshrl.u32 %v458_v52, 16  ;;  %v550_v8 = vrot.slane %v548_v61, 4  ;;  %3911 = vmatprep.subr.msk.bf16.mxu1 %vm315_vm0, %v4265_v7  ;;  %v878_v40 = vld [vmem:[%s4254_s28 + $0x34] sm:$0xf] }
  0x36   : > { %v536_v5 = vsel %vm4341_vm7, %v531_v59, %v535_v45  ;;  %v541_v6 = vrot.slane %v540_v60, 4  ;;  %v553_v9 = vrot.slane %v551_v62, 5  ;;  %3912 = vmatprep.subr.msk.bf16.mxu0 %vm315_vm0, %v4272_v10  ;;  %v559_v17 = vrot.slane %v557_v2, 5  ;;  %v879_v46 = vld [vmem:[%s4254_s28 + $0x38] sm:$0x1] }
  0x37   : > { %v936_v14 = vsel %vm4329_vm6, %v934_v1, %v935_v57  ;;  %v563_v13 = vrot.slane %v561_v3, 4  ;;  %v567_v16 = vshll.u32 %v459_v58, 16  ;;  %v3379_v26 = vrot.slane %v874_v63, 9  ;;  %v463_v51 = vld [vmem:[%s4254_s28 + $0x3c] sm:$0xf] }
  0x38   : > { %v546_v20 = vsel %vm4341_vm7, %v541_v6, %v545_v53  ;;  %v3387_v22 = vcombine.low %v933_v0, %v936_v14  ;;  %v554_v24 = vor.u32 %v553_v9, %v550_v8  ;;  %v939_v10 = vrot.slane %v875_v4, 5  ;;  %v464_v57 = vld [vmem:[%s4254_s28 + $0x40] sm:$0xf]  ;;  %v465_v62 = vld [vmem:[%s4254_s28 + $0x44] sm:$0x1] }
  0x39   : > { %v3362_v7 = vcombine.low %v536_v5, %v546_v20  ;;  %v564_v28 = vor.u32 %v563_v13, %v559_v17  ;;  %v569_v29 = vrot.slane %v567_v16, 5  ;;  %v942_v32 = vrot.slane %v876_v11, 5  ;;  %v880_v3 = vld [vmem:[%s4254_s28 + $0x3c] sm:$0xe]  ;;  %v881_v9 = vld [vmem:[%s4254_s28 + $0x40] sm:$0xf] }
  0x3a   : > { %3783 = vmatprep.mubr.msk.bf16.mxu0 %vm290_vm1, %v3387_v22  ;;  %v555_v31 = vrot.slane %v554_v24, 4  ;;  %v572_v33 = vshrl.u32 %v460_v18, 16  ;;  %v575_v34 = vshll.u32 %v460_v18, 16  ;;  %v940_v37 = vsel %vm4329_vm6, %v3379_v26, %v939_v10  ;;  %v882_v16 = vld [vmem:[%s4254_s28 + $0x44] sm:$0x1] }
  0x3b   : > { %3765 = vmatprep.mubr.msk.bf16.mxu1 %vm290_vm1, %v3362_v7  ;;  %v565_v36 = vrot.slane %v564_v28, 4  ;;  %v941_v38 = vrot.slane %v939_v10, 4  ;;  %v581_v39 = vshll.u32 %v461_v27, 16  ;;  %v585_v45 = vshrl.u32 %v461_v27, 16  ;;  %v466_v26 = vld [vmem:[%s4254_s28 + $0x48] sm:$0xf] }
  0x3c   : > { %v560_v41 = vsel %vm4341_vm7, %v555_v31, %v559_v17  ;;  %v574_v43 = vrot.slane %v572_v33, 4  ;;  %v577_v44 = vrot.slane %v575_v34, 5  ;;  %v591_v50 = vshll.u32 %v462_v30, 16  ;;  %v467_v10 = vld [vmem:[%s4254_s28 + $0x4c] sm:$0xf] }
  0x3d   : > { %v570_v47 = vsel %vm4341_vm7, %v565_v36, %v569_v29  ;;  %v943_v48 = vsel %vm4329_vm6, %v941_v38, %v942_v32  ;;  %v583_v49 = vrot.slane %v581_v39, 5  ;;  %v587_v56 = vrot.slane %v585_v45, 4  ;;  %v468_v30 = vld [vmem:[%s4254_s28 + $0x50] sm:$0x1]  ;;  %v883_v39 = vld [vmem:[%s4254_s28 + $0x48] sm:$0xe] }
  0x3e   : > { %v3363_v52 = vcombine.low %v560_v41, %v570_v47  ;;  %v3388_v53 = vcombine.low %v940_v37, %v943_v48  ;;  %v578_v54 = vor.u32 %v577_v44, %v574_v43  ;;  %v593_v58 = vrot.slane %v591_v50, 5 }
  0x3f   : > { %v3380_v59 = vrot.slane %v877_v35, 9  ;;  %v946_v60 = vrot.slane %v878_v40, 5  ;;  %v949_v61 = vrot.slane %v879_v46, 5  ;;  %v588_v0 = vor.u32 %v587_v56, %v583_v49  ;;  %v884_v40 = vld [vmem:[%s4254_s28 + $0x4c] sm:$0xf] }
  0x40   : > { %3766 = vmatmul.mubr.msk.bf16.gmra.mxu1 %vm290_vm1, %v3363_v52  ;;  %3784 = vmatmul.mubr.msk.bf16.gmra.mxu0 %vm290_vm1, %v3388_v53  ;;  %v579_v63 = vrot.slane %v578_v54, 4  ;;  %v596_v1 = vshrl.u32 %v463_v51, 16  ;;  %v599_v2 = vshll.u32 %v463_v51, 16  ;;  %v605_v6 = vshll.u32 %v464_v57, 16  ;;  %v885_v46 = vld [vmem:[%s4254_s28 + $0x50] sm:$0x1] }
  0x41   : > { %v947_v4 = vsel %vm4329_vm6, %v3380_v59, %v946_v60  ;;  %v948_v5 = vrot.slane %v946_v60, 4  ;;  %v609_v8 = vshrl.u32 %v464_v57, 16  ;;  %v589_v14 = vrot.slane %v588_v0, 4  ;;  %v469_v51 = vld [vmem:[%s4254_s28 + $0x54] sm:$0xf] }
  0x42   : > { %v584_v11 = vsel %vm4341_vm7, %v579_v63, %v583_v49  ;;  %v598_v17 = vrot.slane %v596_v1, 4  ;;  %v601_v13 = vrot.slane %v599_v2, 5  ;;  %v607_v20 = vrot.slane %v605_v6, 5 }
  0x43   : > { %v950_v18 = vsel %vm4329_vm6, %v948_v5, %v949_v61  ;;  %v611_v22 = vrot.slane %v609_v8, 4  ;;  %v615_v24 = vshll.u32 %v465_v62, 16  ;;  %v594_v27 = vsel %vm4341_vm7, %v589_v14, %v593_v58  ;;  %v470_v61 = vld [vmem:[%s4254_s28 + $0x58] sm:$0xf]  ;;  %v471_v62 = vld [vmem:[%s4254_s28 + $0x5c] sm:$0x1] }
  0x44   : > { %v3389_v7 = vcombine.low %v947_v4, %v950_v18  ;;  %v602_v28 = vor.u32 %v601_v13, %v598_v17  ;;  %v3381_v29 = vrot.slane %v880_v3, 9  ;;  %v3364_v31 = vcombine.low %v584_v11, %v594_v27  ;;  %v886_v3 = vld [vmem:[%s4254_s28 + $0x54] sm:$0xe] }
  0x45   : > { %v612_v32 = vor.u32 %v611_v22, %v607_v20  ;;  %v617_v33 = vrot.slane %v615_v24, 5  ;;  %v953_v34 = vrot.slane %v881_v9, 5  ;;  %v956_v36 = vrot.slane %v882_v16, 5  ;;  %v887_v9 = vld [vmem:[%s4254_s28 + $0x58] sm:$0xf] }
  0x46   : > { %3787 = vmatprep.mubr.msk.bf16.mxu0 %vm290_vm1, %v3389_v7  ;;  %v603_v35 = vrot.slane %v602_v28, 4  ;;  %v620_v37 = vshrl.u32 %v466_v26, 16  ;;  %v623_v38 = vshll.u32 %v466_v26, 16  ;;  %3769 = vmatprep.mubr.msk.bf16.mxu1 %vm290_vm1, %v3364_v31  ;;  %v629_v45 = vshll.u32 %v467_v10, 16  ;;  %v888_v24 = vld [vmem:[%s4254_s28 + $0x5c] sm:$0x1] }
  0x47   : > { %v613_v41 = vrot.slane %v612_v32, 4  ;;  %v954_v43 = vsel %vm4329_vm6, %v3381_v29, %v953_v34  ;;  %v955_v44 = vrot.slane %v953_v34, 4  ;;  %v633_v50 = vshrl.u32 %v467_v10, 16  ;;  %v3436_v29 = vld [vmem:[%s4254_s28 + $0xc] sm:$0xf] }
  0x48   : > { %v608_v47 = vsel %vm4341_vm7, %v603_v35, %v607_v20  ;;  %v622_v48 = vrot.slane %v620_v37, 4  ;;  %v625_v49 = vrot.slane %v623_v38, 5  ;;  %v631_v54 = vrot.slane %v629_v45, 5  ;;  %v3438_v38 = vld [vmem:[%s4254_s28 + $0x14] sm:$0x1] }
  0x49   : > { %v618_v52 = vsel %vm4341_vm7, %v613_v41, %v617_v33  ;;  %v957_v53 = vsel %vm4329_vm6, %v955_v44, %v956_v36  ;;  %v639_v56 = vshll.u32 %v468_v30, 16  ;;  %v635_v60 = vrot.slane %v633_v50, 4  ;;  %v3437_v33 = vld [vmem:[%s4254_s28 + $0x10] sm:$0xf]  ;;  %v3439_v44 = vld [vmem:[%s4254_s28 + $0x18] sm:$0xf] }
  0x4a   : > { %v3365_v57 = vcombine.low %v608_v47, %v618_v52  ;;  %v3390_v58 = vcombine.low %v954_v43, %v957_v53  ;;  %v626_v59 = vor.u32 %v625_v49, %v622_v48  ;;  %v3382_v0 = vrot.slane %v883_v39, 9  ;;  %v3440_v49 = vld [vmem:[%s4254_s28 + $0x1c] sm:$0xf] }
  0x4b   : > { %v641_v63 = vrot.slane %v639_v56, 5  ;;  %v960_v1 = vrot.slane %v884_v40, 5  ;;  %v963_v2 = vrot.slane %v885_v46, 5  ;;  %v636_v5 = vor.u32 %v635_v60, %v631_v54  ;;  %v3441_v60 = vld [vmem:[%s4254_s28 + $0x20] sm:$0x1] }
  0x4c   : > { %3770 = vmatmul.mubr.msk.bf16.gmra.mxu1 %vm290_vm1, %v3365_v57  ;;  %3788 = vmatmul.mubr.msk.bf16.gmra.mxu0 %vm290_vm1, %v3390_v58  ;;  %v627_v4 = vrot.slane %v626_v59, 4  ;;  %v644_v6 = vshrl.u32 %v469_v51, 16  ;;  %v647_v8 = vshll.u32 %v469_v51, 16  ;;  %v653_v17 = vshll.u32 %v470_v61, 16  ;;  %v4000_v51 = vld [vmem:[%s4254_s28 + $0xc] sm:$0xff]  }
  0x4d   : > { %v961_v11 = vsel %vm4329_vm6, %v3382_v0, %v960_v1  ;;  %v962_v14 = vrot.slane %v960_v1, 4  ;;  %v657_v13 = vshrl.u32 %v470_v61, 16  ;;  %v637_v18 = vrot.slane %v636_v5, 4  ;;  %v3442_v1 = vld [vmem:[%s4254_s28 + $0x24] sm:$0xf] }
  0x4e   : > { %v632_v16 = vsel %vm4341_vm7, %v627_v4, %v631_v54  ;;  %v646_v20 = vrot.slane %v644_v6, 4  ;;  %v649_v22 = vrot.slane %v647_v8, 5  ;;  %v655_v27 = vrot.slane %v653_v17, 5 }
  0x4f   : > { %v964_v26 = vsel %vm4329_vm6, %v962_v14, %v963_v2  ;;  %v659_v7 = vrot.slane %v657_v13, 4  ;;  %v663_v28 = vshll.u32 %v471_v62, 16  ;;  %v642_v10 = vsel %vm4341_vm7, %v637_v18, %v641_v63  ;;  %v3443_v2 = vld [vmem:[%s4254_s28 + $0x28] sm:$0xf]  ;;  %v3444_v18 = vld [vmem:[%s4254_s28 + $0x2c] sm:$0x1] }
  0x50   : > { %v3391_v30 = vcombine.low %v961_v11, %v964_v26  ;;  %v650_v31 = vor.u32 %v649_v22, %v646_v20  ;;  %v3383_v32 = vrot.slane %v886_v3, 9  ;;  %v3366_v34 = vcombine.low %v632_v16, %v642_v10 }
  0x51   : > { %v660_v35 = vor.u32 %v659_v7, %v655_v27  ;;  %v665_v36 = vrot.slane %v663_v28, 5  ;;  %v967_v37 = vrot.slane %v887_v9, 5  ;;  %v970_v40 = vrot.slane %v888_v24, 5  ;;  %v3445_v7 = vld [vmem:[%s4254_s28 + $0x30] sm:$0xf]  ;;  %v4001_v28 = vld [vmem:[%s4254_s28 + $0x18] sm:$0xff]  }
  0x52   : > { %3791 = vmatprep.mubr.msk.bf16.mxu0 %vm290_vm1, %v3391_v30  ;;  %v651_v39 = vrot.slane %v650_v31, 4  ;;  %v1429_v41 = vshrl.u32 %v3436_v29, 16  ;;  %v1432_v43 = vshll.u32 %v3436_v29, 16  ;;  %3773 = vmatprep.mubr.msk.bf16.mxu1 %vm290_vm1, %v3366_v34  ;;  %v1438_v48 = vshll.u32 %v3437_v33, 16 }
  0x53   : > { %v661_v45 = vrot.slane %v660_v35, 4  ;;  %v968_v46 = vsel %vm4329_vm6, %v3383_v32, %v967_v37  ;;  %v969_v47 = vrot.slane %v967_v37, 4  ;;  %v1442_v54 = vshrl.u32 %v3437_v33, 16  ;;  %v3446_v32 = vld [vmem:[%s4254_s28 + $0x34] sm:$0xf] }
  0x54   : > { %v656_v50 = vsel %vm4341_vm7, %v651_v39, %v655_v27  ;;  %v1431_v52 = vrot.slane %v1429_v41, 4  ;;  %v1434_v53 = vrot.slane %v1432_v43, 5  ;;  %v1440_v58 = vrot.slane %v1438_v48, 5  ;;  %v4002_v39 = vld [vmem:[%s4254_s28 + $0x24] sm:$0xff]  }
  0x55   : > { %v666_v56 = vsel %vm4341_vm7, %v661_v45, %v665_v36  ;;  %v971_v57 = vsel %vm4329_vm6, %v969_v47, %v970_v40  ;;  %v1448_v59 = vshll.u32 %v3438_v38, 16  ;;  %v1444_v0 = vrot.slane %v1442_v54, 4 }
  0x56   : > { %v3367_v61 = vcombine.low %v656_v50, %v666_v56  ;;  %v3392_v62 = vcombine.low %v968_v46, %v971_v57  ;;  %v1435_v63 = vor.u32 %v1434_v53, %v1431_v52  ;;  %v1453_v4 = vshrl.u32 %v3439_v44, 16  ;;  %v3447_v46 = vld [vmem:[%s4254_s28 + $0x38] sm:$0x1]  ;;  %v3448_v52 = vld [vmem:[%s4254_s28 + $0x3c] sm:$0xf] }
  0x57   : > { %v1450_v3 = vrot.slane %v1448_v59, 5  ;;  %v1456_v5 = vshll.u32 %v3439_v44, 16  ;;  %v1462_v6 = vshll.u32 %v3440_v49, 16  ;;  %v1445_v9 = vor.u32 %v1444_v0, %v1440_v58  ;;  %v4003_v0 = vld [vmem:[%s4254_s28 + $0x30] sm:$0xff]  }
  0x58   : > { %3774 = vmatmul.mubr.msk.bf16.gmra.mxu1 %vm290_vm1, %v3367_v61  ;;  %3792 = vmatmul.mubr.msk.bf16.gmra.mxu0 %vm290_vm1, %v3392_v62  ;;  %v1436_v8 = vrot.slane %v1435_v63, 4  ;;  %v1466_v11 = vshrl.u32 %v3440_v49, 16  ;;  %v1472_v14 = vshll.u32 %v3441_v60, 16  ;;  %v1455_v17 = vrot.slane %v1453_v4, 4 }
  0x59   : > { %3797 = vmatprep.mubr.msk.bf16.mxu1 %vm290_vm1, %v4000_v51  ;;  %v1458_v13 = vrot.slane %v1456_v5, 5  ;;  %v1464_v16 = vrot.slane %v1462_v6, 5  ;;  %v1477_v20 = vshrl.u32 %v3442_v1, 16  ;;  %v1446_v24 = vrot.slane %v1445_v9, 4  ;;  %v3450_v5 = vld [vmem:[%s4254_s28 + $0x44] sm:$0x1] }
  0x5a   : > { %v1441_v22 = vsel %vm4341_vm7, %v1436_v8, %v1440_v58  ;;  %v1468_v26 = vrot.slane %v1466_v11, 4  ;;  %v1474_v27 = vrot.slane %v1472_v14, 5  ;;  %v1480_v30 = vshll.u32 %v3442_v1, 16  ;;  %v3449_v58 = vld [vmem:[%s4254_s28 + $0x40] sm:$0xf] }
  0x5b   : > { %v1459_v29 = vor.u32 %v1458_v13, %v1455_v17  ;;  %v1479_v10 = vrot.slane %v1477_v20, 4  ;;  %v1486_v31 = vshll.u32 %v3443_v2, 16  ;;  %v1451_v33 = vsel %vm4341_vm7, %v1446_v24, %v1450_v3  ;;  %v3451_v9 = vld [vmem:[%s4254_s28 + $0x48] sm:$0xf]  ;;  %v3452_v13 = vld [vmem:[%s4254_s28 + $0x4c] sm:$0xf] }
  0x5c   : > { %v1469_v34 = vor.u32 %v1468_v26, %v1464_v16  ;;  %v1490_v35 = vshrl.u32 %v3443_v2, 16  ;;  %v1496_v36 = vshll.u32 %v3444_v18, 16  ;;  %v3461_v37 = vcombine.low %v1441_v22, %v1451_v33  ;;  %v4004_v20 = vld [vmem:[%s4254_s28 + $0x3c] sm:$0xff]   ;;  %v3455_v33 = vld [vmem:[%s4254_s28 + $0x58] sm:$0xf] }
  0x5d   : > { %v1460_v38 = vrot.slane %v1459_v29, 4  ;;  %v1482_v40 = vrot.slane %v1480_v30, 5  ;;  %v1488_v41 = vrot.slane %v1486_v31, 5  ;;  %v1501_v47 = vshrl.u32 %v3445_v7, 16 }
  0x5e   : > { %v1470_v43 = vrot.slane %v1469_v34, 4  ;;  %v1492_v44 = vrot.slane %v1490_v35, 4  ;;  %v1498_v45 = vrot.slane %v1496_v36, 5  ;;  %3815 = vmatprep.mubr.msk.bf16.mxu0 %vm290_vm1, %v3461_v37  ;;  %v1504_v50 = vshll.u32 %v3445_v7, 16  ;;  %v3453_v7 = vld [vmem:[%s4254_s28 + $0x50] sm:$0x1] }
  0x5f   : > { %v1465_v48 = vsel %vm4341_vm7, %v1460_v38, %v1464_v16  ;;  %v1483_v49 = vor.u32 %v1482_v40, %v1479_v10  ;;  %v1510_v51 = vshll.u32 %v3446_v32, 16  ;;  %v1503_v56 = vrot.slane %v1501_v47, 4 }
  0x60   : > { %3798 = vmatmul.mubr.msk.bf16.vlgmr.msra.gmra.mxu1 %vm290_vm1, %v4001_v28  ;;  %v1475_v53 = vsel %vm4341_vm7, %v1470_v43, %v1474_v27  ;;  %v1493_v54 = vor.u32 %v1492_v44, %v1488_v41  ;;  %v1514_v57 = vshrl.u32 %v3446_v32, 16  ;;  %v1506_v61 = vrot.slane %v1504_v50, 5  ;;  %v3454_v32 = vld [vmem:[%s4254_s28 + $0x54] sm:$0xf]  ;;  %v4005_v43 = vld [vmem:[%s4254_s28 + $0x48] sm:$0xff]  }
  0x61   : > { %v3462_v59 = vcombine.low %v1465_v48, %v1475_v53  ;;  %3832 = vmatpush3.bf16.msra.mxu1 %v4299_v19  ;;  %3801 = vmatprep.mubr.msk.bf16.mxu1 %vm290_vm1, %v4002_v39  ;;  %v1484_v60 = vrot.slane %v1483_v49, 4  ;;  %v1512_v62 = vrot.slane %v1510_v51, 5  ;;  %v1520_v2 = vshll.u32 %v3447_v46, 16  ;;  %v4006_v49 = vld [vmem:[%s4254_s28 + $0x54] sm:$0xff]   ;;  %v3456_v50 = vld [vmem:[%s4254_s28 + $0x5c] sm:$0x1] }
  0x62   : > { %v1494_v63 = vrot.slane %v1493_v54, 4  ;;  %v1516_v1 = vrot.slane %v1514_v57, 4  ;;  %v1525_v3 = vshrl.u32 %v3448_v52, 16  ;;  %3913 = vmatprep.subr.msk.bf16.mxu1 %vm315_vm0, %v4278_v12  ;;  %v1507_v4 = vor.u32 %v1506_v61, %v1503_v56  ;;  %v3457_v53 = vld [vmem:[%s4254_s28 + $0x60] sm:$0xf] }
  0x63   : > { %3816 = vmatmul.mubr.msk.bf16.vlgmr.msra.gmra.mxu0 %vm290_vm1, %v3462_v59  ;;  %v1489_v19 = vsel %vm4341_vm7, %v1484_v60, %v1488_v41  ;;  %v1528_v6 = vshll.u32 %v3448_v52, 16  ;;  %v1534_v8 = vshll.u32 %v3449_v58, 16  ;;  %v1522_v17 = vrot.slane %v1520_v2, 5  ;;  %v3458_v59 = vld [vmem:[%s4254_s28 + $0x64] sm:$0xf] }
  0x64   : > { %3850 = vmatpush3.bf16.msra.mxu0 %v4305_v21  ;;  %v1499_v11 = vsel %vm4341_vm7, %v1494_v63, %v1498_v45  ;;  %v1517_v14 = vor.u32 %v1516_v1, %v1512_v62  ;;  %v1527_v12 = vrot.slane %v1525_v3, 4  ;;  %v1508_v18 = vrot.slane %v1507_v4, 4  ;;  %v3459_v3 = vld [vmem:[%s4254_s28 + $0x68] sm:$0x1]  ;;  %v3477_v4 = vld [vmem:[%s4254_s28 + $0xc] sm:$0xe] }
  0x65   : > { %v3463_v16 = vcombine.low %v1489_v19, %v1499_v11  ;;  %v1530_v22 = vrot.slane %v1528_v6, 5  ;;  %v1536_v24 = vrot.slane %v1534_v8, 5  ;;  %3914 = vmatprep.subr.msk.bf16.mxu0 %vm315_vm0, %v4288_v15  ;;  %v1538_v27 = vshrl.u32 %v3449_v58, 16  ;;  %v3478_v11 = vld [vmem:[%s4254_s28 + $0x10] sm:$0xf] }
  0x66   : > { %v1518_v26 = vrot.slane %v1517_v14, 4  ;;  %v1544_v21 = vshll.u32 %v3450_v5, 16  ;;  %v1549_v28 = vshrl.u32 %v3451_v9, 16  ;;  %v1513_v29 = vsel %vm4341_vm7, %v1508_v18, %v1512_v62  ;;  %v3480_v18 = vld [vmem:[%s4254_s28 + $0x18] sm:$0xe] }
  0x67   : > { %3819 = vmatprep.mubr.msk.bf16.mxu0 %vm290_vm1, %v3463_v16  ;;  %v1531_v10 = vor.u32 %v1530_v22, %v1527_v12  ;;  %v1552_v30 = vshll.u32 %v3451_v9, 16  ;;  %v1558_v31 = vshll.u32 %v3452_v13, 16  ;;  %v1540_v34 = vrot.slane %v1538_v27, 4  ;;  %v3479_v16 = vld [vmem:[%s4254_s28 + $0x14] sm:$0x1] }
  0x68   : > { %3802 = vmatmul.mubr.msk.bf16.gmra.mxu1 %vm290_vm1, %v4003_v0  ;;  %v1523_v15 = vsel %vm4341_vm7, %v1518_v26, %v1522_v17  ;;  %v1546_v35 = vrot.slane %v1544_v21, 5  ;;  %v1551_v36 = vrot.slane %v1549_v28, 4  ;;  %v1562_v44 = vshrl.u32 %v3452_v13, 16  ;;  %v3481_v27 = vld [vmem:[%s4254_s28 + $0x1c] sm:$0xf] }
  0x69   : > { %v3464_v37 = vcombine.low %v1513_v29, %v1523_v15  ;;  %3805 = vmatprep.mubr.msk.bf16.mxu1 %vm290_vm1, %v4004_v20  ;;  %v1532_v38 = vrot.slane %v1531_v10, 4  ;;  %v1554_v39 = vrot.slane %v1552_v30, 5  ;;  %v1560_v40 = vrot.slane %v1558_v31, 5  ;;  %v3482_v10 = vld [vmem:[%s4254_s28 + $0x20] sm:$0x1] }
  0x6a   : > { %v1541_v41 = vor.u32 %v1540_v34, %v1536_v24  ;;  %v1568_v45 = vshll.u32 %v3453_v7, 16  ;;  %v1573_v46 = vshrl.u32 %v3454_v32, 16  ;;  %v1576_v51 = vshll.u32 %v3454_v32, 16  ;;  %v3483_v15 = vld [vmem:[%s4254_s28 + $0x24] sm:$0xe] }
  0x6b   : > { %3820 = vmatmul.mubr.msk.bf16.gmra.mxu0 %vm290_vm1, %v3464_v37  ;;  %v1537_v47 = vsel %vm4341_vm7, %v1532_v38, %v1536_v24  ;;  %v1555_v48 = vor.u32 %v1554_v39, %v1551_v36  ;;  %v1582_v52 = vshll.u32 %v3455_v33, 16  ;;  %v1564_v56 = vrot.slane %v1562_v44, 4  ;;  %v3484_v34 = vld [vmem:[%s4254_s28 + $0x28] sm:$0xf] }
  0x6c   : > { %v1542_v54 = vrot.slane %v1541_v41, 4  ;;  %v1570_v57 = vrot.slane %v1568_v45, 5  ;;  %v1575_v58 = vrot.slane %v1573_v46, 4  ;;  %v1578_v61 = vrot.slane %v1576_v51, 5  ;;  %v3486_v46 = vld [vmem:[%s4254_s28 + $0x30] sm:$0xe] }
  0x6d   : > { %v1556_v60 = vrot.slane %v1555_v48, 4  ;;  %v1584_v62 = vrot.slane %v1582_v52, 5  ;;  %v1586_v63 = vshrl.u32 %v3455_v33, 16  ;;  %v1565_v1 = vor.u32 %v1564_v56, %v1560_v40  ;;  %v3487_v51 = vld [vmem:[%s4254_s28 + $0x34] sm:$0xf] }
  0x6e   : > { %v1547_v0 = vsel %vm4341_vm7, %v1542_v54, %v1546_v35  ;;  %v1592_v2 = vshll.u32 %v3456_v50, 16  ;;  %v1597_v19 = vshrl.u32 %v3457_v53, 16  ;;  %v1579_v8 = vor.u32 %v1578_v61, %v1575_v58  ;;  %v4007_v35 = vld [vmem:[%s4254_s28 + $0x60] sm:$0xff]   ;;  %v3488_v52 = vld [vmem:[%s4254_s28 + $0x38] sm:$0x1] }
  0x6f   : > { %v3465_v5 = vcombine.low %v1537_v47, %v1547_v0  ;;  %v1561_v6 = vsel %vm4341_vm7, %v1556_v60, %v1560_v40  ;;  %v1588_v9 = vrot.slane %v1586_v63, 4  ;;  %v1566_v14 = vrot.slane %v1565_v1, 4  ;;  %v3485_v40 = vld [vmem:[%s4254_s28 + $0x2c] sm:$0x1]  ;;  %v3489_v58 = vld [vmem:[%s4254_s28 + $0x3c] sm:$0xe] }
  0x70   : > { %3806 = vmatmul.mubr.msk.bf16.gmra.mxu1 %vm290_vm1, %v4005_v43  ;;  %v1594_v17 = vrot.slane %v1592_v2, 5  ;;  %v1599_v12 = vrot.slane %v1597_v19, 4  ;;  %v1600_v13 = vshll.u32 %v3457_v53, 16  ;;  %v1580_v20 = vrot.slane %v1579_v8, 4  ;;  %v3491_v60 = vld [vmem:[%s4254_s28 + $0x44] sm:$0x1] }
  0x71   : > { %3823 = vmatprep.mubr.msk.bf16.mxu0 %vm290_vm1, %v3465_v5  ;;  %3809 = vmatprep.mubr.msk.bf16.mxu1 %vm290_vm1, %v4006_v49  ;;  %v1589_v22 = vor.u32 %v1588_v9, %v1584_v62  ;;  %v1606_v24 = vshll.u32 %v3458_v59, 16  ;;  %v1610_v26 = vshrl.u32 %v3458_v59, 16  ;;  %v1571_v21 = vsel %vm4341_vm7, %v1566_v14, %v1570_v57  ;;  %v3490_v59 = vld [vmem:[%s4254_s28 + $0x40] sm:$0xf]  ;;  %v4008_v63 = vld [vmem:[%s4254_s28 + $0x18] sm:$0xff]  }
  0x72   : > { %v1602_v7 = vrot.slane %v1600_v13, 5  ;;  %v1616_v28 = vshll.u32 %v3459_v3, 16  ;;  %v3501_v29 = vrot.slane %v3477_v4, 9  ;;  %v3466_v30 = vcombine.low %v1561_v6, %v1571_v21  ;;  %v3492_v5 = vld [vmem:[%s4254_s28 + $0x48] sm:$0xe] }
  0x73   : > { %v1585_v31 = vsel %vm4341_vm7, %v1580_v20, %v1584_v62  ;;  %v1590_v32 = vrot.slane %v1589_v22, 4  ;;  %v1608_v33 = vrot.slane %v1606_v24, 5  ;;  %v1612_v37 = vrot.slane %v1610_v26, 4  ;;  %v3493_v6 = vld [vmem:[%s4254_s28 + $0x4c] sm:$0xf] }
  0x74   : > { %v1603_v36 = vor.u32 %v1602_v7, %v1599_v12  ;;  %v1618_v38 = vrot.slane %v1616_v28, 5  ;;  %v1868_v39 = vrot.slane %v3478_v11, 5  ;;  %3824 = vmatmul.mubr.msk.bf16.gmra.mxu0 %vm290_vm1, %v3466_v30  ;;  %v1871_v43 = vrot.slane %v3479_v16, 5  ;;  %v3495_v20 = vld [vmem:[%s4254_s28 + $0x54] sm:$0xe] }
  0x75   : > { %v1595_v41 = vsel %vm4341_vm7, %v1590_v32, %v1594_v17  ;;  %v3502_v44 = vrot.slane %v3480_v18, 9  ;;  %v1875_v45 = vrot.slane %v3481_v27, 5  ;;  %v1613_v49 = vor.u32 %v1612_v37, %v1608_v33  ;;  %v3494_v17 = vld [vmem:[%s4254_s28 + $0x50] sm:$0x1]  ;;  %v3496_v22 = vld [vmem:[%s4254_s28 + $0x58] sm:$0xf] }
  0x76   : > { %v3467_v47 = vcombine.low %v1585_v31, %v1595_v41  ;;  %v1604_v48 = vrot.slane %v1603_v36, 4  ;;  %v1869_v50 = vsel %vm4329_vm6, %v3501_v29, %v1868_v39  ;;  %v1870_v53 = vrot.slane %v1868_v39, 4  ;;  %v3497_v7 = vld [vmem:[%s4254_s28 + $0x5c] sm:$0x1]  ;;  %v3498_v30 = vld [vmem:[%s4254_s28 + $0x60] sm:$0xe] }
  0x77   : > { %v1876_v54 = vsel %vm4329_vm6, %v3502_v44, %v1875_v45  ;;  %v1877_v56 = vrot.slane %v1875_v45, 4  ;;  %v1878_v57 = vrot.slane %v3482_v10, 5  ;;  %v1614_v62 = vrot.slane %v1613_v49, 4  ;;  %v3561_v44 = vld [vmem:[%s4254_s28 + $0x18] sm:$0xf] }
  0x78   : > { %3827 = vmatprep.mubr.msk.bf16.mxu0 %vm290_vm1, %v3467_v47  ;;  %3810 = vmatmul.mubr.msk.bf16.gmra.mxu1 %vm290_vm1, %v4007_v35  ;;  %v1609_v61 = vsel %vm4341_vm7, %v1604_v48, %v1608_v33  ;;  %v3503_v0 = vrot.slane %v3483_v15, 9  ;;  %v1882_v1 = vrot.slane %v3484_v34, 5  ;;  %v1872_v2 = vsel %vm4329_vm6, %v1870_v53, %v1871_v43  ;;  %v3499_v15 = vld [vmem:[%s4254_s28 + $0x64] sm:$0xf]  ;;  %v3562_v45 = vld [vmem:[%s4254_s28 + $0x1c] sm:$0xf] }
  0x79   : > { %v1879_v3 = vsel %vm4329_vm6, %v1877_v56, %v1878_v57  ;;  %v1885_v19 = vrot.slane %v3485_v40, 5  ;;  %v3504_v4 = vrot.slane %v3486_v46, 9  ;;  %v1619_v8 = vsel %vm4341_vm7, %v1614_v62, %v1618_v38  ;;  %v3500_v38 = vld [vmem:[%s4254_s28 + $0x68] sm:$0x1]  ;;  %v3603_v62 = vld [vmem:[%s4254_s28 + $0x1c] sm:$0xf] }
  0x7a   : > { %v3510_v9 = vcombine.low %v1869_v50, %v1872_v2  ;;  %v3511_v11 = vcombine.low %v1876_v54, %v1879_v3  ;;  %v1883_v14 = vsel %vm4329_vm6, %v3503_v0, %v1882_v1  ;;  %v3468_v12 = vcombine.low %v1609_v61, %v1619_v8  ;;  %v4009_v46 = vld [vmem:[%s4254_s28 + $0x24] sm:$0xff]   ;;  %v3604_v3 = vld [vmem:[%s4254_s28 + $0x20] sm:$0x1] }
  0x7b   : > { %v1884_v13 = vrot.slane %v1882_v1, 4  ;;  %v1889_v16 = vrot.slane %v3487_v51, 5  ;;  %v1892_v18 = vrot.slane %v3488_v52, 5  ;;  %v3505_v24 = vrot.slane %v3489_v58, 9  ;;  %v3563_v51 = vld [vmem:[%s4254_s28 + $0x20] sm:$0x1] }
  0x7c   : > { %3833 = vmatprep.mubr.msk.bf16.mxu1 %vm290_vm1, %v3510_v9  ;;  %v1896_v26 = vrot.slane %v3490_v59, 5  ;;  %v1899_v27 = vrot.slane %v3491_v60, 5  ;;  %v3506_v21 = vrot.slane %v3492_v5, 9  ;;  %3828 = vmatmul.mubr.msk.bf16.gmra.mxu0 %vm290_vm1, %v3468_v12  ;;  %v1903_v10 = vrot.slane %v3493_v6, 5  ;;  %v4010_v52 = vld [vmem:[%s4254_s28 + $0x30] sm:$0xff]  }
  0x7d   : > { %v1886_v28 = vsel %vm4329_vm6, %v1884_v13, %v1885_v19  ;;  %v1891_v29 = vrot.slane %v1889_v16, 4  ;;  %3851 = vmatprep.mubr.msk.bf16.mxu0 %vm290_vm1, %v4008_v63  ;;  %v1906_v33 = vrot.slane %v3494_v17, 5  ;;  %v1890_v34 = vsel %vm4329_vm6, %v3504_v4, %v1889_v16  ;;  %v3602_v58 = vld [vmem:[%s4254_s28 + $0x18] sm:$0xe]  ;;  %v3564_v8 = vld [vmem:[%s4254_s28 + $0x24] sm:$0xf] }
  0x7e   : > { %v3512_v31 = vcombine.low %v1883_v14, %v1886_v28  ;;  %v1898_v32 = vrot.slane %v1896_v26, 4  ;;  %v1897_v36 = vsel %vm4329_vm6, %v3505_v24, %v1896_v26  ;;  %v1905_v37 = vrot.slane %v1903_v10, 4  ;;  %v3565_v9 = vld [vmem:[%s4254_s28 + $0x28] sm:$0xf] }
  0x7f   : > { %v1893_v35 = vsel %vm4329_vm6, %v1891_v29, %v1892_v18  ;;  %v4605_v40 = vsel %vm4329_vm6, %v3506_v21, %v1903_v10  ;;  %v3507_v41 = vrot.slane %v3495_v20, 9  ;;  %v1910_v43 = vrot.slane %v3496_v22, 5  ;;  %v4011_v22 = vld [vmem:[%s4254_s28 + $0x3c] sm:$0xff]  }
  0x80   : > { %3834 = vmatmul.mubr.msk.bf16.vlgmr.msra.gmra.mxu1 %vm290_vm1, %v3511_v11  ;;  %v1900_v39 = vsel %vm4329_vm6, %v1898_v32, %v1899_v27  ;;  %v4614_v47 = vsel %vm4329_vm6, %v1905_v37, %v1906_v33  ;;  %v1913_v48 = vrot.slane %v3497_v7, 5  ;;  %v3508_v49 = vrot.slane %v3498_v30, 9  ;;  %v4012_v7 = vld [vmem:[%s4254_s28 + $0x48] sm:$0xff]  }
  0x81   : > { %3868 = vmatpush3.bf16.msra.mxu1 %v4311_v23  ;;  %3837 = vmatprep.mubr.msk.bf16.mxu1 %vm290_vm1, %v3512_v31  ;;  %v1917_v50 = vrot.slane %v3499_v15, 5  ;;  %v3513_v53 = vcombine.low %v1890_v34, %v1893_v35  ;;  %v3514_v54 = vcombine.low %v1897_v36, %v1900_v39  ;;  %v1912_v56 = vrot.slane %v1910_v43, 4  ;;  %v3605_v31 = vld [vmem:[%s4254_s28 + $0x24] sm:$0xe]  ;;  %v3606_v35 = vld [vmem:[%s4254_s28 + $0x28] sm:$0xf] }
  0x82   : > { %v1920_v57 = vrot.slane %v3500_v38, 5  ;;  %v3515_v23 = vcombine.low %v4605_v40, %v4614_v47  ;;  %v2379_v60 = vshrl.u32 %v3561_v44, 16  ;;  %v2382_v61 = vshll.u32 %v3561_v44, 16 }
  0x83   : > { %v1919_v59 = vrot.slane %v1917_v50, 4  ;;  %v4624_v63 = vsel %vm4329_vm6, %v3507_v41, %v1910_v43  ;;  %v2388_v0 = vshll.u32 %v3562_v45, 16  ;;  %v2392_v1 = vshrl.u32 %v3562_v45, 16  ;;  %v3607_v41 = vld [vmem:[%s4254_s28 + $0x2c] sm:$0x1] }
  0x84   : > { %v2398_v2 = vshll.u32 %v3563_v51, 16  ;;  %3852 = vmatmul.mubr.msk.bf16.vlgmr.msra.gmra.mxu0 %vm290_vm1, %v4009_v46  ;;  %v4630_v19 = vsel %vm4329_vm6, %v1912_v56, %v1913_v48  ;;  %v4634_v4 = vsel %vm4329_vm6, %v3508_v49, %v1917_v50  ;;  %v2381_v5 = vrot.slane %v2379_v60, 4  ;;  %v3567_v43 = vld [vmem:[%s4254_s28 + $0x30] sm:$0xf]  ;;  %v3568_v49 = vld [vmem:[%s4254_s28 + $0x34] sm:$0xf] }
  0x85   : > { %v2384_v6 = vrot.slane %v2382_v61, 5  ;;  %3886 = vmatpush3.bf16.msra.mxu0 %v4318_v25  ;;  %3855 = vmatprep.mubr.msk.bf16.mxu0 %vm290_vm1, %v4010_v52  ;;  %v4642_v11 = vsel %vm4329_vm6, %v1919_v59, %v1920_v57  ;;  %v2390_v14 = vrot.slane %v2388_v0, 5  ;;  %v2394_v17 = vrot.slane %v2392_v1, 4  ;;  %v3566_v25 = vld [vmem:[%s4254_s28 + $0x2c] sm:$0x1] }
  0x86   : > { %v2400_v12 = vrot.slane %v2398_v2, 5  ;;  %v3626_v16 = vrot.slane %v3602_v58, 9  ;;  %v2818_v18 = vrot.slane %v3603_v62, 5  ;;  %v2821_v20 = vrot.slane %v3604_v3, 5  ;;  %v3569_v57 = vld [vmem:[%s4254_s28 + $0x38] sm:$0x1] }
  0x87   : > { %v2385_v13 = vor.u32 %v2384_v6, %v2381_v5  ;;  %v2395_v24 = vor.u32 %v2394_v17, %v2390_v14  ;;  %v2403_v26 = vshrl.u32 %v3564_v8, 16  ;;  %v2406_v27 = vshll.u32 %v3564_v8, 16  ;;  %v3570_v0 = vld [vmem:[%s4254_s28 + $0x3c] sm:$0xf]  ;;  %v3571_v5 = vld [vmem:[%s4254_s28 + $0x40] sm:$0xf] }
  0x88   : > { %3838 = vmatmul.mubr.msk.bf16.gmra.mxu1 %vm290_vm1, %v3513_v53  ;;  %v2412_v21 = vshll.u32 %v3565_v9, 16  ;;  %v3516_v28 = vcombine.low %v4624_v63, %v4630_v19  ;;  %v2820_v10 = vrot.slane %v2818_v18, 4  ;;  %v2416_v30 = vshrl.u32 %v3565_v9, 16  ;;  %v4013_v6 = vld [vmem:[%s4254_s28 + $0x54] sm:$0xff]  }
  0x89   : > { %3841 = vmatprep.mubr.msk.bf16.mxu1 %vm290_vm1, %v3514_v54  ;;  %v2386_v29 = vrot.slane %v2385_v13, 4  ;;  %v2396_v32 = vrot.slane %v2395_v24, 4  ;;  %v2405_v33 = vrot.slane %v2403_v26, 4  ;;  %v2408_v15 = vrot.slane %v2406_v27, 5  ;;  %v3610_v27 = vld [vmem:[%s4254_s28 + $0x38] sm:$0x1] }
  0x8a   : > { %v2414_v34 = vrot.slane %v2412_v21, 5  ;;  %v3517_v36 = vcombine.low %v4634_v4, %v4642_v11  ;;  %v4657_v37 = vsel %vm4329_vm6, %v3626_v16, %v2818_v18  ;;  %v2418_v38 = vrot.slane %v2416_v30, 4  ;;  %v3608_v18 = vld [vmem:[%s4254_s28 + $0x30] sm:$0xe] }
  0x8b   : > { %v2422_v39 = vshll.u32 %v3566_v25, 16  ;;  %v2391_v44 = vsel %vm4341_vm7, %v2386_v29, %v2390_v14  ;;  %v2401_v45 = vsel %vm4341_vm7, %v2396_v32, %v2400_v12  ;;  %v4667_v46 = vsel %vm4329_vm6, %v2820_v10, %v2821_v20  ;;  %v4014_v14 = vld [vmem:[%s4254_s28 + $0x60] sm:$0xff]   ;;  %v3609_v20 = vld [vmem:[%s4254_s28 + $0x34] sm:$0xf]  ;;  %v3611_v10 = vld [vmem:[%s4254_s28 + $0x3c] sm:$0xe] }
  0x8c   : > { %v2409_v48 = vor.u32 %v2408_v15, %v2405_v33  ;;  %3856 = vmatmul.mubr.msk.bf16.gmra.mxu0 %vm290_vm1, %v4011_v22  ;;  %v2419_v50 = vor.u32 %v2418_v38, %v2414_v34  ;;  %v3627_v52 = vrot.slane %v3605_v31, 9  ;;  %v2825_v53 = vrot.slane %v3606_v35, 5  ;;  %v3612_v15 = vld [vmem:[%s4254_s28 + $0x40] sm:$0xf] }
  0x8d   : > { %v2424_v51 = vrot.slane %v2422_v39, 5  ;;  %3859 = vmatprep.mubr.msk.bf16.mxu0 %vm290_vm1, %v4012_v7  ;;  %v2828_v56 = vrot.slane %v3607_v41, 5  ;;  %v2427_v58 = vshrl.u32 %v3567_v43, 16  ;;  %v2430_v59 = vshll.u32 %v3567_v43, 16  ;;  %v3613_v41 = vld [vmem:[%s4254_s28 + $0x44] sm:$0x1] }
  0x8e   : > { %v2410_v54 = vrot.slane %v2409_v48, 4  ;;  %v3635_v60 = vcombine.low %v4657_v37, %v4667_v46  ;;  %v2420_v61 = vrot.slane %v2419_v50, 4  ;;  %v2827_v62 = vrot.slane %v2825_v53, 4 }
  0x8f   : > { %v2436_v63 = vshll.u32 %v3568_v49, 16  ;;  %v3586_v1 = vcombine.low %v2391_v44, %v2401_v45  ;;  %v2429_v2 = vrot.slane %v2427_v58, 4  ;;  %v2432_v3 = vrot.slane %v2430_v59, 5 }
  0x90   : > { %3842 = vmatmul.mubr.msk.bf16.gmra.mxu1 %vm290_vm1, %v3515_v23  ;;  %v2440_v19 = vshrl.u32 %v3568_v49, 16  ;;  %v2415_v8 = vsel %vm4341_vm7, %v2410_v54, %v2414_v34  ;;  %v4687_v9 = vsel %vm4329_vm6, %v3627_v52, %v2825_v53  ;;  %v2446_v47 = vshll.u32 %v3569_v57, 16  ;;  %v3572_v23 = vld [vmem:[%s4254_s28 + $0x44] sm:$0x1]  ;;  %v3573_v49 = vld [vmem:[%s4254_s28 + $0x48] sm:$0xf] }
  0x91   : > { %3845 = vmatprep.mubr.msk.bf16.mxu1 %vm290_vm1, %v3516_v28  ;;  %v2438_v40 = vrot.slane %v2436_v63, 5  ;;  %v2425_v17 = vsel %vm4341_vm7, %v2420_v61, %v2424_v51  ;;  %v4695_v12 = vsel %vm4329_vm6, %v2827_v62, %v2828_v56  ;;  %v2433_v13 = vor.u32 %v2432_v3, %v2429_v2  ;;  %v3574_v54 = vld [vmem:[%s4254_s28 + $0x4c] sm:$0xf] }
  0x92   : > { %v2442_v16 = vrot.slane %v2440_v19, 4  ;;  %v2448_v22 = vrot.slane %v2446_v47, 5  ;;  %v2451_v24 = vshrl.u32 %v3570_v0, 16  ;;  %v2454_v25 = vshll.u32 %v3570_v0, 16  ;;  %v4015_v56 = vld [vmem:[%s4254_s28 + $0x6c] sm:$0xff]  }
  0x93   : > { %v2460_v26 = vshll.u32 %v3571_v5, 16  ;;  %v2434_v21 = vrot.slane %v2433_v13, 4  ;;  %v2464_v28 = vshrl.u32 %v3571_v5, 16  ;;  %v2470_v29 = vshll.u32 %v3572_v23, 16  ;;  %v3576_v19 = vld [vmem:[%s4254_s28 + $0x54] sm:$0xf] }
  0x94   : > { %v2443_v7 = vor.u32 %v2442_v16, %v2438_v40  ;;  %3860 = vmatmul.mubr.msk.bf16.gmra.mxu0 %vm290_vm1, %v4013_v6  ;;  %v3587_v30 = vcombine.low %v2415_v8, %v2425_v17  ;;  %v2453_v31 = vrot.slane %v2451_v24, 4  ;;  %v2456_v32 = vrot.slane %v2454_v25, 5  ;;  %v3577_v47 = vld [vmem:[%s4254_s28 + $0x58] sm:$0xf]  ;;  %v3578_v23 = vld [vmem:[%s4254_s28 + $0x5c] sm:$0x1] }
  0x95   : > { %v2462_v33 = vrot.slane %v2460_v26, 5  ;;  %3863 = vmatprep.mubr.msk.bf16.mxu0 %vm290_vm1, %v4014_v14  ;;  %v2439_v34 = vsel %vm4341_vm7, %v2434_v21, %v2438_v40  ;;  %v2466_v38 = vrot.slane %v2464_v28, 4  ;;  %v3628_v39 = vrot.slane %v3608_v18, 9  ;;  %v3614_v25 = vld [vmem:[%s4254_s28 + $0x48] sm:$0xe] }
  0x96   : > { %v2444_v35 = vrot.slane %v2443_v7, 4  ;;  %v2457_v43 = vor.u32 %v2456_v32, %v2453_v31  ;;  %v2472_v44 = vrot.slane %v2470_v29, 5  ;;  %v2832_v45 = vrot.slane %v3609_v20, 5  ;;  %v3615_v28 = vld [vmem:[%s4254_s28 + $0x4c] sm:$0xf] }
  0x97   : > { %v2835_v48 = vrot.slane %v3610_v27, 5  ;;  %v2467_v51 = vor.u32 %v2466_v38, %v2462_v33  ;;  %v3629_v52 = vrot.slane %v3611_v10, 9  ;;  %v2839_v53 = vrot.slane %v3612_v15, 5 }
  0x98   : > { %3846 = vmatmul.mubr.msk.bf16.gmra.mxu1 %vm290_vm1, %v3517_v36  ;;  %v2449_v50 = vsel %vm4341_vm7, %v2444_v35, %v2448_v22  ;;  %v3636_v57 = vcombine.low %v4687_v9, %v4695_v12  ;;  %v2458_v58 = vrot.slane %v2457_v43, 4  ;;  %v2834_v59 = vrot.slane %v2832_v45, 4 }
  0x99   : > { %3869 = vmatprep.mubr.msk.bf16.mxu1 %vm290_vm1, %v3586_v1  ;;  %v2842_v4 = vrot.slane %v3613_v41, 5  ;;  %v2468_v11 = vrot.slane %v2467_v51, 4  ;;  %v4721_v36 = vsel %vm4329_vm6, %v3628_v39, %v2832_v45  ;;  %v2841_v61 = vrot.slane %v2839_v53, 4  ;;  %v3575_v1 = vld [vmem:[%s4254_s28 + $0x50] sm:$0x1] }
  0x9a   : > { %v2475_v62 = vshrl.u32 %v3573_v49, 16  ;;  %v3588_v63 = vcombine.low %v2439_v34, %v2449_v50  ;;  %v2836_v0 = vsel %vm4329_vm6, %v2834_v59, %v2835_v48  ;;  %v2478_v2 = vshll.u32 %v3573_v49, 16  ;;  %v3617_v34 = vld [vmem:[%s4254_s28 + $0x54] sm:$0xe]  ;;  %v3618_v49 = vld [vmem:[%s4254_s28 + $0x58] sm:$0xf] }
  0x9b   : > { %v2484_v3 = vshll.u32 %v3574_v54, 16  ;;  %v2463_v5 = vsel %vm4341_vm7, %v2458_v58, %v2462_v33  ;;  %v2473_v6 = vsel %vm4341_vm7, %v2468_v11, %v2472_v44  ;;  %v4733_v8 = vsel %vm4329_vm6, %v3629_v52, %v2839_v53  ;;  %v3619_v53 = vld [vmem:[%s4254_s28 + $0x5c] sm:$0x1] }
  0x9c   : > { %v2477_v40 = vrot.slane %v2475_v62, 4  ;;  %3864 = vmatmul.mubr.msk.bf16.gmra.mxu0 %vm290_vm1, %v4015_v56  ;;  %v3637_v14 = vcombine.low %v4721_v36, %v2836_v0  ;;  %v4741_v17 = vsel %vm4329_vm6, %v2841_v61, %v2842_v4  ;;  %v2480_v13 = vrot.slane %v2478_v2, 5  ;;  %v3580_v4 = vld [vmem:[%s4254_s28 + $0x64] sm:$0xf]  ;;  %v3582_v62 = vld [vmem:[%s4254_s28 + $0x6c] sm:$0xf] }
  0x9d   : > { %v2486_v16 = vrot.slane %v2484_v3, 5  ;;  %3887 = vmatprep.mubr.msk.bf16.mxu0 %vm290_vm1, %v3635_v60  ;;  %v2488_v18 = vshrl.u32 %v3574_v54, 16  ;;  %v2494_v20 = vshll.u32 %v3575_v1, 16  ;;  %v2499_v22 = vshrl.u32 %v3576_v19, 16  ;;  %v3616_v60 = vld [vmem:[%s4254_s28 + $0x50] sm:$0x1] }
  0x9e   : > { %v2502_v24 = vshll.u32 %v3576_v19, 16  ;;  %v2481_v26 = vor.u32 %v2480_v13, %v2477_v40  ;;  %v2508_v27 = vshll.u32 %v3577_v47, 16  ;;  %v2512_v21 = vshrl.u32 %v3577_v47, 16  ;;  %v3583_v3 = vld [vmem:[%s4254_s28 + $0x70] sm:$0xf] }
  0x9f   : > { %v2518_v7 = vshll.u32 %v3578_v23, 16  ;;  %v3589_v29 = vcombine.low %v2463_v5, %v2473_v6  ;;  %v2490_v10 = vrot.slane %v2488_v18, 4  ;;  %v2501_v37 = vrot.slane %v2499_v22, 4  ;;  %v3584_v40 = vld [vmem:[%s4254_s28 + $0x74] sm:$0x1] }
  0xa0   : > { %3870 = vmatmul.mubr.msk.bf16.vlgmr.msra.gmra.mxu1 %vm290_vm1, %v3587_v30  ;;  %v2504_v46 = vrot.slane %v2502_v24, 5  ;;  %v2482_v31 = vrot.slane %v2481_v26, 4  ;;  %v2496_v32 = vrot.slane %v2494_v20, 5  ;;  %v2510_v33 = vrot.slane %v2508_v27, 5  ;;  %v3579_v30 = vld [vmem:[%s4254_s28 + $0x60] sm:$0xf] }
  0xa1   : > { %3873 = vmatprep.mubr.msk.bf16.mxu1 %vm290_vm1, %v3588_v63  ;;  %v2514_v15 = vrot.slane %v2512_v21, 4  ;;  %v2491_v35 = vor.u32 %v2490_v10, %v2486_v16  ;;  %v3630_v39 = vrot.slane %v3614_v25, 9  ;;  %v2846_v41 = vrot.slane %v3615_v28, 5  ;;  %v3620_v13 = vld [vmem:[%s4254_s28 + $0x60] sm:$0xe] }
  0xa2   : > { %v2505_v38 = vor.u32 %v2504_v46, %v2501_v37  ;;  %v2487_v43 = vsel %vm4341_vm7, %v2482_v31, %v2486_v16  ;;  %v2520_v45 = vrot.slane %v2518_v7, 5  ;;  %v2849_v48 = vrot.slane %v3616_v60, 5  ;;  %v3621_v24 = vld [vmem:[%s4254_s28 + $0x64] sm:$0xf]  ;;  %v3622_v7 = vld [vmem:[%s4254_s28 + $0x68] sm:$0x1] }
  0xa3   : > { %v2515_v44 = vor.u32 %v2514_v15, %v2510_v33  ;;  %v2492_v50 = vrot.slane %v2491_v35, 4  ;;  %v2848_v52 = vrot.slane %v2846_v41, 4  ;;  %v3631_v54 = vrot.slane %v3617_v34, 9 }
  0xa4   : > { %v2506_v51 = vrot.slane %v2505_v38, 4  ;;  %3888 = vmatmul.mubr.msk.bf16.vlgmr.msra.gmra.mxu0 %vm290_vm1, %v3636_v57  ;;  %v3638_v56 = vcombine.low %v4733_v8, %v4741_v17  ;;  %v2847_v59 = vsel %vm4329_vm6, %v3630_v39, %v2846_v41  ;;  %v2523_v11 = vshrl.u32 %v3579_v30, 16  ;;  %v3581_v57 = vld [vmem:[%s4254_s28 + $0x68] sm:$0x1] }
  0xa5   : > { %v2516_v58 = vrot.slane %v2515_v44, 4  ;;  %3891 = vmatprep.mubr.msk.bf16.mxu0 %vm290_vm1, %v3637_v14  ;;  %v2497_v36 = vsel %vm4341_vm7, %v2492_v50, %v2496_v32  ;;  %v2850_v9 = vsel %vm4329_vm6, %v2848_v52, %v2849_v48  ;;  %v2853_v12 = vrot.slane %v3618_v49, 5  ;;  %v3625_v44 = vld [vmem:[%s4254_s28 + $0x74] sm:$0x1] }
  0xa6   : > { %v2526_v61 = vshll.u32 %v3579_v30, 16  ;;  %v3590_v63 = vcombine.low %v2487_v43, %v2497_v36  ;;  %v2511_v0 = vsel %vm4341_vm7, %v2506_v51, %v2510_v33  ;;  %v2856_v2 = vrot.slane %v3619_v53, 5  ;;  %v3624_v33 = vld [vmem:[%s4254_s28 + $0x70] sm:$0xf]  ;;  %v3623_v43 = vld [vmem:[%s4254_s28 + $0x6c] sm:$0xe] }
  0xa7   : > { %v2521_v1 = vsel %vm4341_vm7, %v2516_v58, %v2520_v45  ;;  %v3639_v19 = vcombine.low %v2847_v59, %v2850_v9  ;;  %v2854_v5 = vsel %vm4329_vm6, %v3631_v54, %v2853_v12  ;;  %v2525_v6 = vrot.slane %v2523_v11, 4  ;;  %s3653_s28 = sshll.u32 %s4126_s16, 1 }
  0xa8   : > { %3874 = vmatmul.mubr.msk.bf16.gmra.mxu1 %vm290_vm1, %v3589_v29  ;;  %v2528_v8 = vrot.slane %v2526_v61, 5  ;;  %v2532_v47 = vshll.u32 %v3580_v4, 16  ;;  %v2536_v23 = vshrl.u32 %v3580_v4, 16  ;;  %v2542_v14 = vshll.u32 %v3581_v57, 16  ;;  %s5026_s4 = sadd.s32 %s4122_s15, %s3653_s28 }
  0xa9   : > { %3877 = vmatprep.mubr.msk.bf16.mxu1 %vm290_vm1, %v3590_v63  ;;  %v2547_v17 = vshrl.u32 %v3582_v62, 16  ;;  %v2855_v16 = vrot.slane %v2853_v12, 4  ;;  %v2550_v20 = vshll.u32 %v3582_v62, 16  ;;  %v2556_v22 = vshll.u32 %v3583_v3, 16  ;;  %s3656_s5 = sshll.u32 %s5026_s4, 5 }
  0xaa   : > { %v2529_v18 = vor.u32 %v2528_v8, %v2525_v6  ;;  %v3591_v25 = vcombine.low %v2511_v0, %v2521_v1  ;;  %v2534_v26 = vrot.slane %v2532_v47, 5  ;;  %v2538_v27 = vrot.slane %v2536_v23, 4  ;;  %s5032_s15 = scalar_lea.hbm %s5103_s3, %s3656_s5 }
  0xab   : > { %v2544_v21 = vrot.slane %v2542_v14, 5  ;;  %v2549_v29 = vrot.slane %v2547_v17, 4  ;;  %v2552_v10 = vrot.slane %v2550_v20, 5  ;;  %v2558_v37 = vrot.slane %v2556_v22, 5 }
  0xac   : > { %v2530_v28 = vrot.slane %v2529_v18, 4  ;;  %3892 = vmatmul.mubr.msk.bf16.gmra.mxu0 %vm290_vm1, %v3638_v56  ;;  %v2539_v46 = vor.u32 %v2538_v27, %v2534_v26  ;;  %v2560_v60 = vshrl.u32 %v3583_v3, 16  ;;  %v2566_v31 = vshll.u32 %v3584_v40, 16 }
  0xad   : > { %v3632_v32 = vrot.slane %v3620_v13, 9  ;;  %3895 = vmatprep.mubr.msk.bf16.mxu0 %vm290_vm1, %v3639_v19  ;;  %v2857_v15 = vsel %vm4329_vm6, %v2855_v16, %v2856_v2  ;;  %v2553_v34 = vor.u32 %v2552_v10, %v2549_v29  ;;  %v2860_v35 = vrot.slane %v3621_v24, 5 }
  0xae   : > { %v2863_v38 = vrot.slane %v3622_v7, 5  ;;  %v2535_v39 = vsel %vm4341_vm7, %v2530_v28, %v2534_v26  ;;  %v2540_v41 = vrot.slane %v2539_v46, 4  ;;  %v2562_v30 = vrot.slane %v2560_v60, 4 }
  0xaf   : > { %v2554_v45 = vrot.slane %v2553_v34, 4  ;;  %v2861_v48 = vsel %vm4329_vm6, %v3632_v32, %v2860_v35  ;;  %v2862_v49 = vrot.slane %v2860_v35, 4  ;;  %v2867_v50 = vrot.slane %v3624_v33, 5 }
  0xb0   : > { %3878 = vmatmul.mubr.msk.bf16.gmra.mxu1 %vm290_vm1, %v3591_v25  ;;  %v3640_v51 = vcombine.low %v2854_v5, %v2857_v15  ;;  %v2545_v52 = vsel %vm4341_vm7, %v2540_v41, %v2544_v21  ;;  %v2563_v53 = vor.u32 %v2562_v30, %v2558_v37  ;;  %v2568_v54 = vrot.slane %v2566_v31, 5 }
  0xb1   : > { %v3592_v56 = vcombine.low %v2535_v39, %v2545_v52  ;;  %v2864_v58 = vsel %vm4329_vm6, %v2862_v49, %v2863_v38  ;;  %v3633_v59 = vrot.slane %v3623_v43, 9  ;;  %v2870_v4 = vrot.slane %v3625_v44, 5 }
  0xb2   : > { %v2559_v11 = vsel %vm4341_vm7, %v2554_v45, %v2558_v37  ;;  %v2564_v36 = vrot.slane %v2563_v53, 4  ;;  %v3641_v9 = vcombine.low %v2861_v48, %v2864_v58  ;;  %v2869_v12 = vrot.slane %v2867_v50, 4 }
  0xb3   : > { %3881 = vmatprep.mubr.msk.bf16.mxu1 %vm290_vm1, %v3592_v56  ;;  %v2868_v62 = vsel %vm4329_vm6, %v3633_v59, %v2867_v50 }
  0xb4   : > { %3896 = vmatmul.mubr.msk.bf16.gmra.mxu0 %vm290_vm1, %v3640_v51  ;;  %v2569_v57 = vsel %vm4341_vm7, %v2564_v36, %v2568_v54  ;;  %v2871_v63 = vsel %vm4329_vm6, %v2869_v12, %v2870_v4 }
  0xb5   : > { %v3593_v61 = vcombine.low %v2559_v11, %v2569_v57  ;;  %3899 = vmatprep.mubr.msk.bf16.mxu0 %vm290_vm1, %v3641_v9  ;;  %v3642_v0 = vcombine.low %v2868_v62, %v2871_v63 }
  0xb8   : > { %3882 = vmatmul.mubr.msk.bf16.gmra.mxu1 %vm290_vm1, %v3593_v61 }
  0xbc   : > { %3900 = vmatmul.mubr.msk.bf16.gmra.mxu0 %vm290_vm1, %v3642_v0 }
  0xe2   : > { %v3745_v1 = vpop.f32.mrf.mxu0  ;;  %v3753_v2 = vpop.f32.mrf.mxu1 }
  0xe4   : > { %v353_v3 = vpop.f32.mrf.mxu0  ;;  %v385_v19 = vpop.f32.mrf.mxu1 }
  0xe6   : > { %v3746_v55 = vpop.f32.mrf.mxu0  ;;  %v3754_v5 = vpop.f32.mrf.mxu1 }
  0xe8   : > { %v356_v6 = vpop.f32.mrf.mxu0  ;;  %v388_v8 = vpop.f32.mrf.mxu1 }
  0xea   : > { %v3749_v40 = vpop.f32.mrf.mxu0  ;;  %v3757_v47 = vpop.f32.mrf.mxu1 }
  0xec   : > { %v369_v23 = vpop.f32.mrf.mxu0  ;;  %v401_v14 = vpop.f32.mrf.mxu1 }
  0xee   : > { %v3750_v17 = vpop.f32.mrf.mxu0  ;;  %v3758_v42 = vpop.f32.mrf.mxu1 }
  0xf0   : > { %v372_v13 = vpop.f32.mrf.mxu0  ;;  %v404_v16 = vpop.f32.mrf.mxu1 }
  0xf3   : > { %v3763_v18 = vpop.f32.mrf.mxu1 }
  0xf4   : > { %v3781_v20 = vpop.f32.mrf.mxu0  ;;  %v835_v22 = vadd.f32 %v3763_v18, %v3745_v1 }
  0xf5   : > { %v770_v24 = vpop.f32.mrf.mxu1 }
  0xf6   : > { %v1075_v25 = vpop.f32.mrf.mxu0  ;;  %v1140_v26 = vadd.f32 %v3781_v20, %v835_v22  ;;  %v833_v27 = vadd.f32 %v770_v24, %v353_v3 }
  0xf7   : > { %v3764_v21 = vpop.f32.mrf.mxu1 }
  0xf8   : > { %v3782_v7 = vpop.f32.mrf.mxu0  ;;  %v4816_v28 = vadd.f32 %v1075_v25, %v833_v27  ;;  %v836_v29 = vadd.f32 %v3764_v21, %v3746_v55 }
  0xf9   : > { %v773_v10 = vpop.f32.mrf.mxu1 }
  0xfa   : > { %v4818_v37 = vadd.f32 %v3782_v7, %v836_v29  ;;  %v834_v46 = vadd.f32 %v773_v10, %v356_v6  ;;  %v1078_v60 = vpop.f32.mrf.mxu0 }
  0xfc   : > { %v4820_v31 = vadd.f32 %v1078_v60, %v834_v46 }
 0x100   : > { %v3767_v32 = vpop.f32.mrf.mxu1  ;;  %v3785_v33 = vpop.f32.mrf.mxu0 }
 0x101   : > { %v839_v15 = vadd.f32 %v3767_v32, %v3749_v40 }
 0x102   : > { %v786_v34 = vpop.f32.mrf.mxu1  ;;  %v1091_v35 = vpop.f32.mrf.mxu0 }
 0x103   : > { %v1144_v38 = vadd.f32 %v3785_v33, %v839_v15  ;;  %v837_v39 = vadd.f32 %v786_v34, %v369_v23 }
 0x104   : > { %v3768_v41 = vpop.f32.mrf.mxu1  ;;  %v3786_v30 = vpop.f32.mrf.mxu0 }
 0x105   : > { %v4822_v43 = vadd.f32 %v1091_v35, %v837_v39  ;;  %v840_v44 = vadd.f32 %v3768_v41, %v3750_v17 }
 0x106   : > { %v789_v45 = vpop.f32.mrf.mxu1  ;;  %v1094_v50 = vpop.f32.mrf.mxu0 }
 0x107   : > { %v4824_v48 = vadd.f32 %v3786_v30, %v840_v44  ;;  %v838_v49 = vadd.f32 %v789_v45, %v372_v13 }
 0x109   : > { %v4826_v51 = vadd.f32 %v1094_v50, %v838_v49 }
 0x10c   : > { %v3771_v52 = vpop.f32.mrf.mxu1  ;;  %v3789_v53 = vpop.f32.mrf.mxu0 }
 0x10d   : > { %v843_v54 = vadd.f32 %v3771_v52, %v3753_v2 }
 0x10e   : > { %v802_v56 = vpop.f32.mrf.mxu1  ;;  %v1107_v58 = vpop.f32.mrf.mxu0 }
 0x10f   : > { %v1148_v59 = vadd.f32 %v3789_v53, %v843_v54  ;;  %v841_v4 = vadd.f32 %v802_v56, %v385_v19 }
 0x110   : > { %v3772_v11 = vpop.f32.mrf.mxu1  ;;  %v3790_v36 = vpop.f32.mrf.mxu0 }
 0x111   : > { %v4828_v9 = vadd.f32 %v1107_v58, %v841_v4  ;;  %v844_v12 = vadd.f32 %v3772_v11, %v3754_v5 }
 0x112   : > { %v805_v57 = vpop.f32.mrf.mxu1  ;;  %v1110_v63 = vpop.f32.mrf.mxu0 }
 0x113   : > { %v4830_v61 = vadd.f32 %v3790_v36, %v844_v12  ;;  %v842_v62 = vadd.f32 %v805_v57, %v388_v8 }
 0x115   : > { %v4832_v0 = vadd.f32 %v1110_v63, %v842_v62 }
 0x118   : > { %v3775_v1 = vpop.f32.mrf.mxu1  ;;  %v3793_v3 = vpop.f32.mrf.mxu0 }
 0x119   : > { %v847_v55 = vadd.f32 %v3775_v1, %v3757_v47 }
 0x11a   : > { %v818_v2 = vpop.f32.mrf.mxu1  ;;  %v1123_v6 = vpop.f32.mrf.mxu0 }
 0x11b   : > { %v1152_v40 = vadd.f32 %v3793_v3, %v847_v55  ;;  %v845_v23 = vadd.f32 %v818_v2, %v401_v14 }
 0x11c   : > { %v3776_v19 = vpop.f32.mrf.mxu1  ;;  %v3794_v17 = vpop.f32.mrf.mxu0 }
 0x11d   : > { %v4834_v13 = vadd.f32 %v1123_v6, %v845_v23  ;;  %v848_v18 = vadd.f32 %v3776_v19, %v3758_v42 }
 0x11e   : > { %v821_v5 = vpop.f32.mrf.mxu1  ;;  %v1126_v8 = vpop.f32.mrf.mxu0 }
 0x11f   : > { %v4836_v20 = vadd.f32 %v3794_v17, %v848_v18  ;;  %v846_v22 = vadd.f32 %v821_v5, %v404_v16 }
 0x120   : > { %v3799_v24 = vpop.f32.mrf.mxu1 }
 0x121   : > { %5110 = vst [vmem:[#allocation9_spill] sm:$0xff] %v4836_v20  ;;  %v4838_v25 = vadd.f32 %v1126_v8, %v846_v22  ;;  %v1374_v27 = vadd.f32 %v3799_v24, %v1140_v26 }
 0x122   : > { %v1309_v21 = vpop.f32.mrf.mxu1 }
 0x123   : > { %v3817_v47 = vpop.f32.mrf.mxu0 }
 0x124   : > { %v4840_v7 = vadd.f32 %v3817_v47, %v1374_v27  ;;  %v4842_v29 = vpop.f32.mrf.mxu1 }
 0x125   : > { %v1723_v14 = vpop.f32.mrf.mxu0 }
 0x126   : > { %v1312_v10 = vpop.f32.mrf.mxu1 }
 0x127   : > { %v4844_v46 = vpop.f32.mrf.mxu0  ;;  %v1373_v20 = vadd.f32 %v1312_v10, %v4820_v31 }
 0x128   : > { %v3803_v42 = vpop.f32.mrf.mxu1 }
 0x129   : > { %v4846_v60 = vpop.f32.mrf.mxu0  ;;  %v1378_v32 = vadd.f32 %v3803_v42, %v1144_v38 }
 0x12a   : > { %v4848_v16 = vpop.f32.mrf.mxu1 }
 0x12b   : > { %v3821_v33 = vpop.f32.mrf.mxu0 }
 0x12c   : > { %v4850_v15 = vadd.f32 %v3821_v33, %v1378_v32  ;;  %v4852_v26 = vpop.f32.mrf.mxu1 }
 0x12d   : > { %v4854_v34 = vpop.f32.mrf.mxu0 }
 0x12e   : > { %v4856_v35 = vpop.f32.mrf.mxu1 }
 0x12f   : > { %v4858_v39 = vpop.f32.mrf.mxu0 }
 0x130   : > { %v3807_v41 = vpop.f32.mrf.mxu1 }
 0x131   : > { %v4860_v30 = vpop.f32.mrf.mxu0  ;;  %v1382_v44 = vadd.f32 %v3807_v41, %v1148_v59 }
 0x132   : > { %v4862_v45 = vpop.f32.mrf.mxu1 }
 0x134   : > { %v4864_v38 = vpop.f32.mrf.mxu1  ;;  %v3825_v49 = vpop.f32.mrf.mxu0 }
 0x135   : > { %v4866_v50 = vadd.f32 %v3825_v49, %v1382_v44 }
 0x136   : > { %v4868_v52 = vpop.f32.mrf.mxu1  ;;  %v4870_v53 = vpop.f32.mrf.mxu0 }
 0x138   : > { %v3811_v54 = vpop.f32.mrf.mxu1  ;;  %v4872_v56 = vpop.f32.mrf.mxu0 }
 0x139   : > { %v1386_v58 = vadd.f32 %v3811_v54, %v1152_v40 }
 0x13a   : > { %v4874_v4 = vpop.f32.mrf.mxu1  ;;  %v4876_v11 = vpop.f32.mrf.mxu0 }
 0x13c   : > { %v4878_v59 = vpop.f32.mrf.mxu1  ;;  %v3829_v36 = vpop.f32.mrf.mxu0 }
 0x13d   : > { %5111 = vst [vmem:[#allocation10_spill] sm:$0xff] %v4878_v59  ;;  %v4880_v12 = vadd.f32 %v3829_v36, %v1386_v58  ;;  %v1372_v58 = vadd.f32 %v1309_v21, %v4816_v28 }
 0x13e   : > { %v4882_v57 = vpop.f32.mrf.mxu1  ;;  %v4884_v62 = vpop.f32.mrf.mxu0 }
 0x13f   : > { %5112 = vst [vmem:[#allocation11_spill] sm:$0xff] %v4880_v12  ;;  %5113 = vst [vmem:[#allocation12_spill] sm:$0xff] %v4884_v62  ;;  %v1786_v59 = vadd.f32 %v1723_v14, %v1372_v58  ;;  %v1375_v62 = vadd.f32 %v4842_v29, %v4818_v37  ;;  %v1377_v29 = vadd.f32 %v4856_v35, %v4826_v51 }
 0x140   : > { %v3835_v63 = vpop.f32.mrf.mxu1  ;;  %v4886_v1 = vpop.f32.mrf.mxu0  ;;  %v1380_v51 = vadd.f32 %v4862_v45, %v4828_v9  ;;  %v1381_v45 = vadd.f32 %v4868_v52, %v4832_v0 }
 0x141   : > { %5114 = vst [vmem:[#allocation13_spill] sm:$0xff] %v4886_v1  ;;  %v2090_v31 = vadd.f32 %v3835_v63, %v4840_v7  ;;  %v1789_v58 = vadd.f32 %v4844_v46, %v1375_v62  ;;  %v1379_v7 = vadd.f32 %v4852_v26, %v4824_v48 }
 0x142   : > { %v2025_v3 = vpop.f32.mrf.mxu1  ;;  %v4888_v55 = vpop.f32.mrf.mxu0  ;;  %v1794_v9 = vadd.f32 %v4870_v53, %v1380_v51 }
 0x143   : > { %5115 = vst [vmem:[#allocation14_spill] sm:$0xff] %v4888_v55  ;;  %v1793_v48 = vadd.f32 %v4858_v39, %v1379_v7 }
 0x144   : > { %v3836_v2 = vpop.f32.mrf.mxu1  ;;  %v3853_v6 = vpop.f32.mrf.mxu0 }
 0x146   : > { %v2028_v40 = vpop.f32.mrf.mxu1  ;;  %v2259_v23 = vpop.f32.mrf.mxu0 }
 0x148   : > { %v3839_v19 = vpop.f32.mrf.mxu1  ;;  %v3854_v17 = vpop.f32.mrf.mxu0 }
 0x149   : > { %v2094_v26 = vadd.f32 %v3839_v19, %v4850_v15  ;;  %v1384_v19 = vadd.f32 %v4874_v4, %v4834_v13 }
 0x14a   : > { %v2041_v18 = vpop.f32.mrf.mxu1  ;;  %v2262_v5 = vpop.f32.mrf.mxu0 }
 0x14c   : > { %v4890_v22 = vpop.f32.mrf.mxu1  ;;  %v4892_v8 = vpop.f32.mrf.mxu0 }
 0x14e   : > { %v2044_v24 = vpop.f32.mrf.mxu1  ;;  %v2275_v27 = vpop.f32.mrf.mxu0 }
 0x150   : > { %v4894_v47 = vpop.f32.mrf.mxu1  ;;  %v4896_v42 = vpop.f32.mrf.mxu0 }
 0x152   : > { %v4898_v32 = vpop.f32.mrf.mxu1  ;;  %v4900_v33 = vpop.f32.mrf.mxu0 }
 0x153   : > { %v2096_v53 = vadd.f32 %v4898_v32, %v1794_v9  ;;  %v1385_v32 = vadd.f32 %v4882_v57, %v4838_v25 }
 0x154   : > { %v4902_v41 = vpop.f32.mrf.mxu1  ;;  %v4904_v44 = vpop.f32.mrf.mxu0 }
 0x155   : > { %5116 = vst [vmem:[#allocation15_spill] sm:$0xff] %v4902_v41  ;;  %5117 = vst [vmem:[#allocation16_spill] sm:$0xff] %v4904_v44 }
 0x156   : > { %v4906_v49 = vpop.f32.mrf.mxu1  ;;  %v4908_v54 = vpop.f32.mrf.mxu0 }
 0x157   : > { %5118 = vst [vmem:[#allocation17_spill] sm:$0xff] %v4906_v49  ;;  %v2088_v49 = vadd.f32 %v2025_v3, %v1786_v59  ;;  %v2330_v7 = vadd.f32 %v4908_v54, %v2096_v53 }
 0x158   : > { %v4911_v36 = vpop.f32.mrf.mxu1  ;;  %v4913_v12 = vpop.f32.mrf.mxu0 }
 0x159   : > { %5119 = vst [vmem:[#allocation18_spill] sm:$0xff] %v4911_v36  ;;  %5120 = vst [vmem:[#allocation19_spill] sm:$0xff] %v4913_v12  ;;  %v1787_v36 = vadd.f32 %v4846_v60, %v1373_v20  ;;  %v1376_v12 = vadd.f32 %v4848_v16, %v4822_v43  ;;  %v2091_v60 = vadd.f32 %v3836_v2, %v1789_v58 }
 0x15a   : > { %v4915_v1 = vpop.f32.mrf.mxu1  ;;  %v4917_v55 = vpop.f32.mrf.mxu0  ;;  %v2324_v16 = vadd.f32 %v3853_v6, %v2090_v31 }
 0x15b   : > { %v1790_v20 = vadd.f32 %v4854_v34, %v1376_v12  ;;  %v1383_v34 = vadd.f32 %v4864_v38, %v4830_v61  ;;  %v2325_v12 = vadd.f32 %v3854_v17, %v2091_v60  ;;  %v2095_v61 = vadd.f32 %v4890_v22, %v1793_v48  ;;  %v5127_v48 = vld [vmem:[#allocation9_spill] sm:$0xff] }
 0x15c   : > { %v4920_v41 = vpop.f32.mrf.mxu1  ;;  %v4922_v44 = vpop.f32.mrf.mxu0 }
 0x15d   : > { %5121 = vst [vmem:[#allocation20_spill] sm:$0xff] %v4920_v41  ;;  %5122 = vst [vmem:[#allocation21_spill] sm:$0xff] %v4922_v44  ;;  %v2322_v44 = vadd.f32 %v2259_v23, %v2088_v49  ;;  %v2089_v41 = vadd.f32 %v2028_v40, %v1787_v36  ;;  %v2092_v46 = vadd.f32 %v2041_v18, %v1790_v20 }
 0x15e   : > { %v4926_v28 = vpop.f32.mrf.mxu1  ;;  %v4928_v21 = vpop.f32.mrf.mxu0  ;;  %v1791_v40 = vadd.f32 %v4860_v30, %v1377_v29  ;;  %v1797_v36 = vadd.f32 %v4872_v56, %v1383_v34  ;;  %v1795_v56 = vadd.f32 %v4876_v11, %v1381_v45  ;;  %v5126_v34 = vld [vmem:[#allocation15_spill] sm:$0xff] }
 0x160   : > { %v3871_v14 = vpop.f32.mrf.mxu1  ;;  %v4934_v10 = vpop.f32.mrf.mxu0  ;;  %v2093_v6 = vadd.f32 %v2044_v24, %v1791_v40  ;;  %v2328_v24 = vadd.f32 %v4892_v8, %v2094_v26  ;;  %v5128_v26 = vld [vmem:[#allocation10_spill] sm:$0xff] }
 0x161   : > { %5123 = vst [vmem:[#allocation22_spill] sm:$0xff] %v4934_v10  ;;  %v2323_v10 = vadd.f32 %v2262_v5, %v2089_v41  ;;  %v2738_v35 = vadd.f32 %v3871_v14, %v2324_v16  ;;  %v2326_v5 = vadd.f32 %v2275_v27, %v2092_v46  ;;  %v5124_v16 = vld [vmem:[#allocation17_spill] sm:$0xff] }
 0x162   : > { %v2673_v37 = vpop.f32.mrf.mxu1  ;;  %v4939_v59 = vpop.f32.mrf.mxu0  ;;  %v2327_v27 = vadd.f32 %v4900_v33, %v2093_v6  ;;  %v2097_v11 = vadd.f32 %v5124_v16, %v1795_v56  ;;  %v1387_v6 = vadd.f32 %v5128_v26, %v5127_v48  ;;  %v5134_v56 = vld [vmem:[#allocation18_spill] sm:$0xff] }
 0x163   : > { %v2736_v3 = vadd.f32 %v2673_v37, %v2322_v44  ;;  %v2329_v37 = vadd.f32 %v4896_v42, %v2095_v61 }
 0x164   : > { %v3872_v43 = vpop.f32.mrf.mxu1  ;;  %v3889_v63 = vpop.f32.mrf.mxu0 }
 0x165   : > { %v2739_v30 = vadd.f32 %v3872_v43, %v2325_v12  ;;  %v3040_v38 = vadd.f32 %v3889_v63, %v2738_v35  ;;  %v2098_v43 = vadd.f32 %v4894_v47, %v4866_v50  ;;  %v5125_v35 = vld [vmem:[#allocation12_spill] sm:$0xff]  ;;  %v2099_v12 = vadd.f32 %v5126_v34, %v1797_v36 }
 0x166   : > { %v2676_v62 = vpop.f32.mrf.mxu1  ;;  %v2975_v23 = vpop.f32.mrf.mxu0 }
 0x167   : > { %v3038_v2 = vadd.f32 %v2975_v23, %v2736_v3  ;;  %v2737_v44 = vadd.f32 %v2676_v62, %v2323_v10  ;;  %v3110_v29 = vmul.f32 %v3040_v38, %v3040_v38  ;;  %v1798_v23 = vadd.f32 %v5125_v35, %v1384_v19 }
 0x168   : > { %v3875_v49 = vpop.f32.mrf.mxu1  ;;  %v3890_v18 = vpop.f32.mrf.mxu0 }
 0x169   : > { %3146 = vxpose.xlu0.b32.start [1/16] (narrow) %v3038_v2, 8  ;;  %v3108_v0 = vmul.f32 %v3038_v2, %v3038_v2  ;;  %v3041_v52 = vadd.f32 %v3890_v18, %v2739_v30  ;;  %v2742_v20 = vadd.f32 %v3875_v49, %v2328_v24  ;;  %v5129_v18 = vld [vmem:[#allocation16_spill] sm:$0xff]  ;;  %v2331_v30 = vadd.f32 %v4917_v55, %v2097_v11 }
 0x16a   : > { %v2689_v41 = vpop.f32.mrf.mxu1  ;;  %v2978_v17 = vpop.f32.mrf.mxu0 }
 0x16b   : > { %v3039_v39 = vadd.f32 %v2978_v17, %v2737_v44  ;;  %v2740_v14 = vadd.f32 %v2689_v41, %v2326_v5  ;;  %v3111_v42 = vmul.f32 %v3041_v52, %v3041_v52  ;;  %v2332_v5 = vadd.f32 %v5129_v18, %v2098_v43  ;;  %v5135_v43 = vld [vmem:[#allocation20_spill] sm:$0xff] }
 0x16c   : > { %v3876_v15 = vpop.f32.mrf.mxu1  ;;  %v3893_v31 = vpop.f32.mrf.mxu0  ;;  %v2100_v41 = vadd.f32 %v4915_v1, %v1798_v23 }
 0x16d   : > { %v3086_v22 = vadd.f32 %v3039_v39, %v3038_v2  ;;  %v3109_v10 = vmul.f32 %v3039_v39, %v3039_v39  ;;  %3147 = vxpose.xlu0.b32.cont [2/16] (narrow) %v3039_v39, 8  ;;  %v2743_v62 = vadd.f32 %v3876_v15, %v2329_v37  ;;  %v4971_v2 = vadd.f32 %v3893_v31, %v2742_v20  ;;  %v5130_v39 = vld [vmem:[#allocation14_spill] sm:$0xff]  ;;  %v5131_v15 = vld [vmem:[#allocation19_spill] sm:$0xff] }
 0x16e   : > { %v2692_v58 = vpop.f32.mrf.mxu1  ;;  %v2991_v13 = vpop.f32.mrf.mxu0  ;;  %v2333_v19 = vadd.f32 %v5131_v15, %v2099_v12 }
 0x16f   : > { %v3087_v4 = vadd.f32 %v3086_v22, %v3040_v38  ;;  %v3124_v8 = vadd.f32 %v3109_v10, %v3108_v0  ;;  %v3042_v60 = vadd.f32 %v2991_v13, %v2740_v14  ;;  %v2741_v33 = vadd.f32 %v2692_v58, %v2327_v27  ;;  %v5132_v10 = vld [vmem:[#allocation13_spill] sm:$0xff] }
 0x170   : > { %v3879_v3 = vpop.f32.mrf.mxu1  ;;  %v3894_v63 = vpop.f32.mrf.mxu0  ;;  %v1799_v14 = vadd.f32 %v5130_v39, %v1385_v32  ;;  %v3114_v24 = vmul.f32 %v4971_v2, %v4971_v2  ;;  %v1801_v58 = vadd.f32 %v5132_v10, %v1387_v6 }
 0x171   : > { %v3125_v46 = vadd.f32 %v3124_v8, %v3110_v29  ;;  %v3088_v40 = vadd.f32 %v3087_v4, %v3041_v52  ;;  %3148 = vxpose.xlu0.b32.cont [3/16] (narrow) %v3040_v38, 8  ;;  %v3112_v25 = vmul.f32 %v3042_v60, %v3042_v60  ;;  %v4978_v61 = vadd.f32 %v3894_v63, %v2743_v62 }
 0x172   : > { %v2705_v51 = vpop.f32.mrf.mxu1  ;;  %v2994_v57 = vpop.f32.mrf.mxu0  ;;  %v2746_v27 = vadd.f32 %v3879_v3, %v2332_v5  ;;  %v2334_v29 = vadd.f32 %v4928_v21, %v2100_v41  ;;  %v2101_v20 = vadd.f32 %v4926_v28, %v1799_v14 }
 0x173   : > { %v3089_v50 = vadd.f32 %v3088_v40, %v3042_v60  ;;  %v3126_v47 = vadd.f32 %v3125_v46, %v3111_v42  ;;  %v3043_v54 = vadd.f32 %v2994_v57, %v2741_v33  ;;  %v2744_v44 = vadd.f32 %v2705_v51, %v2330_v7  ;;  %v5136_v40 = vld [vmem:[#allocation21_spill] sm:$0xff] }
 0x174   : > { %v3880_v49 = vpop.f32.mrf.mxu1  ;;  %v3897_v9 = vpop.f32.mrf.mxu0  ;;  %v3115_v4 = vmul.f32 %v4978_v61, %v4978_v61  ;;  %v2103_v7 = vadd.f32 %v5135_v43, %v1801_v58  ;;  %v2335_v35 = vadd.f32 %v4939_v59, %v2101_v20 }
 0x175   : > { %v3127_v45 = vadd.f32 %v3126_v47, %v3112_v25  ;;  %v3090_v38 = vadd.f32 %v3089_v50, %v3043_v54  ;;  %v3113_v17 = vmul.f32 %v3043_v54, %v3043_v54  ;;  %3149 = vxpose.xlu0.b32.cont [4/16] (narrow) %v3041_v52, 8  ;;  %v5133_v52 = vld [vmem:[#allocation11_spill] sm:$0xff]  ;;  %v2747_v33 = vadd.f32 %v3880_v49, %v2333_v19  ;;  %v5137_v50 = vld [vmem:[#allocation22_spill] sm:$0xff] }
 0x176   : > { %v2708_v36 = vpop.f32.mrf.mxu1  ;;  %v3007_v53 = vpop.f32.mrf.mxu0  ;;  %v2102_v37 = vadd.f32 %v5134_v56, %v5133_v52  ;;  %v3048_v16 = vadd.f32 %v3897_v9, %v2746_v27  ;;  %v2337_v47 = vadd.f32 %v5137_v50, %v2103_v7 }
 0x177   : > { %v3091_v55 = vadd.f32 %v3090_v38, %v4971_v2  ;;  %v3128_v1 = vadd.f32 %v3127_v45, %v3113_v17  ;;  %v4985_v31 = vadd.f32 %v3007_v53, %v2744_v44  ;;  %v2745_v0 = vadd.f32 %v2708_v36, %v2331_v30 }
 0x178   : > { %v3883_v22 = vpop.f32.mrf.mxu1  ;;  %v3898_v13 = vpop.f32.mrf.mxu0  ;;  %v2336_v51 = vadd.f32 %v5136_v40, %v2102_v37  ;;  %v3118_v44 = vmul.f32 %v3048_v16, %v3048_v16 }
 0x179   : > { %v3129_v8 = vadd.f32 %v3128_v1, %v3114_v24  ;;  %v3092_v3 = vadd.f32 %v3091_v55, %v4978_v61  ;;  %3150 = vxpose.xlu0.b32.cont [5/16] (narrow) %v3042_v60, 8  ;;  %v3116_v11 = vmul.f32 %v4985_v31, %v4985_v31  ;;  %v3049_v34 = vadd.f32 %v3898_v13, %v2747_v33 }
 0x17a   : > { %v2721_v32 = vpop.f32.mrf.mxu1  ;;  %v3010_v63 = vpop.f32.mrf.mxu0  ;;  %v2750_v49 = vadd.f32 %v3883_v22, %v2336_v51 }
 0x17b   : > { %v3093_v21 = vadd.f32 %v3092_v3, %v4985_v31  ;;  %v3130_v28 = vadd.f32 %v3129_v8, %v3115_v4  ;;  %v3047_v42 = vadd.f32 %v3010_v63, %v2745_v0  ;;  %v2748_v46 = vadd.f32 %v2721_v32, %v2334_v29 }
 0x17c   : > { %v3884_v62 = vpop.f32.mrf.mxu1  ;;  %v3901_v23 = vpop.f32.mrf.mxu0  ;;  %v3119_v41 = vmul.f32 %v3049_v34, %v3049_v34 }
 0x17d   : > { %v3131_v60 = vadd.f32 %v3130_v28, %v3116_v11  ;;  %v3094_v12 = vadd.f32 %v3093_v21, %v3047_v42  ;;  %v3117_v25 = vmul.f32 %v3047_v42, %v3047_v42  ;;  %3151 = vxpose.xlu0.b32.cont [6/16] (narrow) %v3043_v54, 8  ;;  %v2751_v59 = vadd.f32 %v3884_v62, %v2337_v47 }
 0x17e   : > { %v2724_v57 = vpop.f32.mrf.mxu1  ;;  %v3023_v48 = vpop.f32.mrf.mxu0  ;;  %v5003_v38 = vadd.f32 %v3901_v23, %v2750_v49 }
 0x17f   : > { %v3095_v26 = vadd.f32 %v3094_v12, %v3048_v16  ;;  %v3132_v6 = vadd.f32 %v3131_v60, %v3117_v25  ;;  %v3050_v18 = vadd.f32 %v3023_v48, %v2748_v46  ;;  %v2749_v5 = vadd.f32 %v2724_v57, %v2335_v35 }
 0x180   : > { %v3902_v30 = vpop.f32.mrf.mxu0 }
 0x181   : > { %v3133_v9 = vadd.f32 %v3132_v6, %v3118_v44  ;;  %v3096_v45 = vadd.f32 %v3095_v26, %v3049_v34  ;;  %3152 = vxpose.xlu0.b32.cont [7/16] (narrow) %v4971_v2, 8  ;;  %v3120_v36 = vmul.f32 %v3050_v18, %v3050_v18  ;;  %v5007_v19 = vadd.f32 %v3902_v30, %v2751_v59 }
 0x182   : > { %v3026_v54 = vpop.f32.mrf.mxu0  ;;  %v3122_v2 = vmul.f32 %v5003_v38, %v5003_v38 }
 0x183   : > { %v3097_v17 = vadd.f32 %v3096_v45, %v3050_v18  ;;  %v3134_v39 = vadd.f32 %v3133_v9, %v3119_v41  ;;  %v5005_v14 = vadd.f32 %v3026_v54, %v2749_v5  ;;  %v3123_v1 = vmul.f32 %v5007_v19, %v5007_v19 }
 0x185   : > { %v3135_v15 = vadd.f32 %v3134_v39, %v3120_v36  ;;  %v3098_v24 = vadd.f32 %v3097_v17, %v5005_v14  ;;  %v3121_v27 = vmul.f32 %v5005_v14, %v5005_v14  ;;  %3153 = vxpose.xlu0.b32.cont [8/16] (narrow) %v4978_v61, 8 }
 0x187   : > { %v3099_v53 = vadd.f32 %v3098_v24, %v5003_v38  ;;  %v3136_v55 = vadd.f32 %v3135_v15, %v3121_v27 }
 0x189   : > { %v3100_v0 = vadd.f32 %v3099_v53, %v5007_v19  ;;  %v3137_v22 = vadd.f32 %v3136_v55, %v3122_v2  ;;  %3154 = vxpose.xlu0.b32.cont [9/16] (narrow) %v4985_v31, 8 }
 0x18b   : > { %v3101_v10 = vrot.slane %v3100_v0, 4  ;;  %v3138_v58 = vadd.f32 %v3137_v22, %v3123_v1 }
 0x18d   : > { %v3102_v52 = vadd.f32 %v3101_v10, %v3100_v0  ;;  %v3139_v56 = vrot.slane %v3138_v58, 4  ;;  %3155 = vxpose.xlu0.b32.cont [10/16] (narrow) %v3047_v42, 8 }
 0x18f   : > { %v3103_v61 = vrot.slane %v3102_v52, 2  ;;  %v3140_v37 = vadd.f32 %v3139_v56, %v3138_v58 }
 0x191   : > { %3156 = vxpose.xlu0.b32.cont [11/16] (narrow) %v3048_v16, 8  ;;  %v3104_v29 = vadd.f32 %v3103_v61, %v3102_v52  ;;  %v3141_v20 = vrot.slane %v3140_v37, 2 }
 0x193   : > { %v3105_v31 = vrot.slane %v3104_v29, 1  ;;  %v3142_v13 = vadd.f32 %v3141_v20, %v3140_v37 }
 0x195   : > { %3157 = vxpose.xlu0.b32.cont [12/16] (narrow) %v3049_v34, 8  ;;  %v3106_v4 = vadd.f32 %v3105_v31, %v3104_v29  ;;  %v3143_v8 = vrot.slane %v3142_v13, 1 }
 0x197   : > { %3107 = vst [vmem:[%s190_s6] sm:$0x1] %v3106_v4  ;;  %v3144_v33 = vadd.f32 %v3143_v8, %v3142_v13 }
 0x199   : > { %3158 = vxpose.xlu0.b32.cont [13/16] (narrow) %v3050_v18, 8  ;;  %3145 = vst [vmem:[%s190_s6 + $0x1] sm:$0x1] %v3144_v33 }
 0x19a   : > { %4029 = shalt.err (!%p4026_p6)
}
 0x19b   : > { %s4030_s24 = scalar_lea.hbm %s5032_s15, 32  ;;  %s4034_s5 = scalar_lea.hbm %s5103_s3, 128 }
 0x19c   : > { %p4031_p7 = scmp.ne.s32.totalorder %s5032_s15, %s4030_s24  ;;  %p4035_p11 = scmp.lt.s32.totalorder %s5032_s15, %s5103_s3 }
 0x19d   : > { %p4036_p12 = scmp.lt.s32.totalorder %s4034_s5, %s4030_s24 }
 0x19e   : > { %p4032_p9 = pnand %p4031_p7, %p4213_p3 }
 0x19f   : > { %p4037_p13 = por %p4036_p12, %p4035_p11 }
 0x1a0   : > { %p4033_p10 = pneg %p4032_p9 }
 0x1a2   : > { %p4038_p0 = pnand %p4037_p13, %p4033_p10 }
 0x1a4   : > { %4041 = shalt.err (!%p4038_p0)
}
 0x1a5   : > { %3917 = dma.vmem_to_hbm [thread:$0]  (%p4213_p3), %s3217_s7, 32, %s5032_s15, %s3186_s9   ;;  %3159 = vxpose.xlu0.b32.cont [14/16] (narrow) %v5005_v14, 8 }
 0x1a6   : > { %s3337_s8 = sshll.u32 %s5021_s27, 2  ;;  %s3654_s10 = sshll.u32 %s5026_s4, 6 }
 0x1a7   : > { %s183_s11 = scalar_lea.vmem [#allocation3], %s3337_s8  ;;  %s3199_s28 = scalar_lea.hbm %s5102_s2, %s3654_s10 }
 0x1a8   : > { %s3201_s20 = sshll.u32 %s183_s11, 4  ;;  %s3181_s7 = scalar_lea.sflag [#allocation4], %s5021_s27  ;;  %s3202_s20 = int_to_ptr.vmem [resolvable:$true] %s3201_s20 }
 0x1a9   : > { %3160 = vxpose.xlu0.b32.cont [15/16] (narrow) %v5003_v38, 8  ;;  %s4042_s15 = scalar_lea.vmem %s3202_s20, 64  ;;  %s4141_s9 = smov [#allocation3]  }
 0x1aa   : > { %p4043_p1 = scmp.ne.s32.totalorder %s3202_s20, %s4042_s15  ;;  %s4046_s29 = sshll.u32 %s4141_s9, 4  ;;  %s4047_s29 = int_to_ptr.vmem [resolvable:$false] %s4046_s29 }
 0x1ab   : > { %s4048_s4 = scalar_lea.vmem %s4047_s29, 128  ;;  %p4049_p5 = scmp.lt.s32.totalorder %s3202_s20, %s4047_s29 }
 0x1ac   : > { %p4044_p2 = pnand %p4043_p1, %p4213_p3  ;;  %p4050_p6 = scmp.lt.s32.totalorder %s4048_s4, %s4042_s15 }
 0x1ad   : > { %3161 = vxpose.xlu0.b32.end [16/16] (narrow) %v5007_v19, 8 }
 0x1ae   : > { %p4045_p4 = pneg %p4044_p2  ;;  %p4051_p7 = por %p4050_p6, %p4049_p5 }
 0x1b0   : > { %p4052_p9 = pnand %p4051_p7, %p4045_p4 }
 0x1ed   : > { %v3162_v3 = vpop.trf.xlu0 }
 0x1ee   : > { %v3178_v32 = vpack.c.bf16 %v3162_v3, %v3162_v3 }
 0x1f0   : > { %3179 = vst [vmem:[%s183_s11] sm:$0xf] %v3178_v32 }
 0x1f1   : > { %4055 = shalt.err (!%p4052_p9)
}
 0x1f2   : > { %s4056_s5 = scalar_lea.hbm %s3199_s28, 64  ;;  %s4060_s16 = scalar_lea.hbm %s5102_s2, 256 }
 0x1f3   : > { %p4057_p10 = scmp.ne.s32.totalorder %s3199_s28, %s4056_s5  ;;  %p4061_p13 = scmp.lt.s32.totalorder %s3199_s28, %s5102_s2 }
 0x1f4   : > { %p4062_p0 = scmp.lt.s32.totalorder %s4060_s16, %s4056_s5 }
 0x1f5   : > { %p4058_p11 = pnand %p4057_p10, %p4213_p3 }
 0x1f6   : > { %p4063_p1 = por %p4062_p0, %p4061_p13 }
 0x1f7   : > { %p4059_p12 = pneg %p4058_p11 }
 0x1f9   : > { %p4064_p2 = pnand %p4063_p1, %p4059_p12 }
 0x1fb   : > { %4067 = shalt.err (!%p4064_p2)
}
 0x1fc   : > { %3916 = dma.vmem_to_hbm [thread:$0]  (%p4213_p3), %s3202_s20, 64, %s3199_s28, %s3181_s7  }
 0x1fd PF: > { %p3927_p4 = scmp.ge.s32.totalorder %s4138_s19, 2  ;;  %s3228_s11 = sand.u32 1, %s4110_s12  }
 0x1fe   : > { %s3229_s21 = scalar_lea.sflag [#allocation4], %s3228_s11 }
 0x1ff   : > { %p3921_p5 = pnand %p3927_p4, %p4222_p8 }
 0x201   : > { %p3922_p6 = pneg %p3921_p5 }
 0x203   : > { %4101 = dma.done.wait (%p3922_p6), %s3229_s21, 64  }
 0x204   : > { %4103 = vsyncadd (%p3922_p6), %s3229_s21, 4294967232  ;;  %s3238_s24 = scalar_lea.sflag [#allocation6], %s3228_s11 }
 0x205   : > { %4105 = dma.done.wait (%p3922_p6), %s3238_s24, 32  }
 0x206   : > { %4107 = vsyncadd (%p3922_p6), %s3238_s24, 4294967264  ;;  %s20_s19 = sadd.s32 1, %s4138_s19   ;;  %s5138_s12 = smov %s4114_s13 }
 0x207   : > { %p17_p7 = scmp.ge.s32.totalorder %s20_s19, 6   ;;  %s5139_s13 = smov %s4118_s14 }
 0x208   : > { %s5140_s14 = smov %s4231_s30  ;;  %s5141_s15 = smov %s4130_s17 }
 0x209   : > { %s5142_s16 = smov %s4134_s18  ;;  %s5143_s17 = smov %s5146_s22 }
 0x20a   : > { %s5144_s18 = smov %s5150_s23  ;;  %19 = sbr.rel (!%p17_p7) target bundleno = 7 (0x7), region = 91 }
 0x20f   :  { %3243 = vsyncpa [#allocation4], 1 }
 0x210   :  { %3245 = vsyncpa [#allocation4 + $0x1], 1 }
 0x211   :  { %3246 = vsyncpa [#allocation6], 1 }
 0x212   :  { %3248 = vsyncpa [#allocation6 + $0x1], 1 }

</bundles_post_ra>
